<compile_context>
chip_gen: v6e
topology: v6e:2x2x1
jax: 0.10.0
libtpu: 0.0.40
codegen_flags: <defaults>
</compile_context>

<pallas_src>
import functools

import jax
import jax.numpy as jnp
from jax.experimental import pallas as pl
from jax.experimental.pallas import tpu as pltpu


def _round_up(x, m):
    return (x + m - 1) // m * m


def _ls_cnn_kernel(K_max, L, tok_ref, emb_ref, w_ref, b_ref, mask_ref,
                   fcw_ref, fcb_ref, out_ref):
    """One batch block (NB sequences) per grid step.

    tok_ref : (NB, L_in)        int32  tokens, time zero-padded to L_in = L+K_max-1
    emb_ref : (V_pad, D)        bf16   mixed embedding table (conv_embed folded in)
    w_ref   : (K_max*D, G_pad)  bf16   fused im2col conv weight (zero-padded)
    b_ref   : (1, G_pad)        f32    fused conv biases
    mask_ref: (L, G_pad)        f32    1.0 where time step t is valid for that branch
    fcw_ref : (G_pad, C_pad)    bf16   final linear weight (zero-padded)
    fcb_ref : (1, C_pad)        f32    final linear bias
    out_ref : (NB, C_pad)       f32    logits (padded class columns are garbage-free 0+bias=0)
    """
    NB, L_in = tok_ref.shape
    V_pad, D = emb_ref.shape
    G_pad = w_ref.shape[-1]

    # --- embedding gather: one-hot MXU matmul (exact row selection) ---------
    tok = tok_ref[...]                                            # (NB, L_in) i32
    iota = jax.lax.broadcasted_iota(jnp.int32, (NB, L_in, V_pad), 2)
    onehot = (tok[:, :, None] == iota).astype(jnp.bfloat16)       # (NB, L_in, V_pad)
    xm = jnp.dot(onehot.reshape(NB * L_in, V_pad), emb_ref[...],
                 preferred_element_type=jnp.float32)
    xm = xm.astype(jnp.bfloat16).reshape(NB, L_in, D)             # (NB, L_in, D)

    # --- all conv branches as ONE im2col matmul ------------------------------
    cols = [xm[:, k:k + L, :].reshape(NB * L, D) for k in range(K_max)]
    im2col = jnp.concatenate(cols, axis=-1)                       # (NB*L, K_max*D)
    acc = jnp.dot(im2col, w_ref[...],
                  preferred_element_type=jnp.float32)             # (NB*L, G_pad)

    # Bias + ReLU in f32; zero invalid trailing time steps per branch (ReLU
    # output >= 0, so the zero mask never changes the valid max), then max-pool
    # over time.
    act = jnp.maximum(acc + b_ref[...], 0.0).reshape(NB, L, G_pad)
    act = act * mask_ref[...][None, :, :]
    feat = jnp.max(act, axis=1)                                   # (NB, G_pad)

    # dropout: identity at inference.  FC: bf16 operands, f32 accumulation.
    logits = jnp.dot(feat.astype(jnp.bfloat16), fcw_ref[...],
                     preferred_element_type=jnp.float32) + fcb_ref[...]
    out_ref[...] = logits                                         # (NB, C_pad)


def ls_cnn_forward(tokens, params, Ks, batch_block=512):
    """Forward pass of LS_CNN (eval mode).  tokens: (N, L) int32 -> (N, C) f32."""
    Ks = tuple(Ks)
    N, L = tokens.shape
    V, D = params["embed_A"].shape
    Co = params["conv_w"][0].shape[2]
    nK, K_max = len(Ks), max(Ks)
    G = nK * Co
    C = params["fc_w"].shape[1]
    assert L >= K_max, "sequence length must be >= max kernel size"

    # Lane-dense padded sizes.
    V_pad = _round_up(V, 128)
    G_pad = _round_up(G, 128)
    C_pad = _round_up(C, 128)
    L_in = L + K_max - 1                       # time padding so shifts never read OOB

    # Batch blocking: NB is always a multiple of 8; keep >= 2 grid steps when
    # there is enough batch to split (v7x has 2 TensorCores).
    NB = _round_up(max(1, min(batch_block, N)), 8)
    if N >= 16 and N <= NB:
        NB = _round_up((N + 1) // 2, 8)
    N_pad = _round_up(N, NB)

    # Tokens are the only per-step data stream (a few KiB of int32 per block).
    tok_p = jnp.pad(tokens.astype(jnp.int32), ((0, N_pad - N), (0, L_in - L)))

    # conv_embed (Conv2d(2,1,(1,1)) == scalar mix of the two embedding planes)
    # folded into a single mixed embedding table, zero-padded along V.
    ce_w, ce_b = params["ce_w"], params["ce_b"]
    emb_mix = (ce_w[0] * params["embed_A"] + ce_w[1] * params["embed_B"]
               + ce_b[0]).astype(jnp.bfloat16)
    emb_p = jnp.pad(emb_mix, ((0, V_pad - V), (0, 0)))            # (V_pad, D)

    # Fuse all Ks conv branches into one im2col weight, bias and validity mask
    # (zero-padded along K for branches with K < K_max and along G up to G_pad).
    w_fused = jnp.zeros((K_max, D, G_pad), jnp.float32)
    b_fused = jnp.zeros((1, G_pad), jnp.float32)
    mask = jnp.zeros((L, G_pad), jnp.float32)
    for g, (K, w, b) in enumerate(zip(Ks, params["conv_w"], params["conv_b"])):
        w_fused = w_fused.at[:K, :, g * Co:(g + 1) * Co].set(w)
        b_fused = b_fused.at[:, g * Co:(g + 1) * Co].set(b)
        mask = mask.at[:L - K + 1, g * Co:(g + 1) * Co].set(1.0)
    w_fused = w_fused.reshape(K_max * D, G_pad).astype(jnp.bfloat16)

    fc_w = jnp.zeros((G_pad, C_pad), jnp.float32).at[:G, :C].set(
        params["fc_w"]).astype(jnp.bfloat16)
    fc_b = jnp.zeros((1, C_pad), jnp.float32).at[:, :C].set(params["fc_b"])

    kernel = functools.partial(_ls_cnn_kernel, K_max, L)

    out = pl.pallas_call(
        kernel,
        grid=(N_pad // NB,),
        in_specs=[
            pl.BlockSpec((NB, L_in), lambda n: (n, 0)),           # tokens (per step)
            pl.BlockSpec((V_pad, D), lambda n: (0, 0)),           # mixed embedding (resident)
            pl.BlockSpec((K_max * D, G_pad), lambda n: (0, 0)),   # fused conv weight
            pl.BlockSpec((1, G_pad), lambda n: (0, 0)),           # fused conv bias
            pl.BlockSpec((L, G_pad), lambda n: (0, 0)),           # time-validity mask
            pl.BlockSpec((G_pad, C_pad), lambda n: (0, 0)),       # fc weight
            pl.BlockSpec((1, C_pad), lambda n: (0, 0)),           # fc bias
        ],
        out_specs=pl.BlockSpec((NB, C_pad), lambda n: (n, 0)),
        out_shape=jax.ShapeDtypeStruct((N_pad, C_pad), jnp.float32),
        compiler_params=pltpu.CompilerParams(
            dimension_semantics=("parallel",),
            vmem_limit_bytes=64 * 1024 * 1024),
    )(tok_p, emb_p, w_fused, b_fused, mask, fc_w, fc_b)
    return out[:N, :C]


def ls_cnn_reference(tokens, params, Ks):
    """Pure-JAX f32 reference mirroring the PyTorch forward (eval mode)."""
    xA = params["embed_A"][tokens].astype(jnp.float32)
    xB = params["embed_B"][tokens].astype(jnp.float32)
    xm = params["ce_w"][0] * xA + params["ce_w"][1] * xB + params["ce_b"][0]
    N, L, D = xm.shape
    feats = []
    for K, w, b in zip(Ks, params["conv_w"], params["conv_b"]):
        T = L - K + 1
        acc = jnp.zeros((N, T, w.shape[2]), jnp.float32)
        for k in range(K):
            acc = acc + jnp.einsum("ntd,dc->ntc", xm[:, k:k + T, :], w[k])
        acc = jax.nn.relu(acc + b[0])
        feats.append(jnp.max(acc, axis=1))                # global max-pool over time
    feat = jnp.concatenate(feats, axis=1)
    return feat @ params["fc_w"] + params["fc_b"][0]


def init_params(key, V, D, Co, Ks, C):
    ks = jax.random.split(key, 8)
    conv_w, conv_b = [], []
    kws = jax.random.split(ks[4], len(Ks))
    kbs = jax.random.split(ks[5], len(Ks))
    for i, K in enumerate(Ks):
        conv_w.append(0.1 * jax.random.normal(kws[i], (K, D, Co), jnp.float32))
        conv_b.append(0.1 * jax.random.normal(kbs[i], (1, Co), jnp.float32))
    return dict(
        embed_A=0.1 * jax.random.normal(ks[0], (V, D), jnp.float32),
        embed_B=0.1 * jax.random.normal(ks[1], (V, D), jnp.float32),  # frozen pretrained in torch
        ce_w=0.5 * jax.random.normal(ks[2], (2,), jnp.float32),
        ce_b=0.1 * jax.random.normal(ks[3], (1,), jnp.float32),
        conv_w=conv_w,
        conv_b=conv_b,
        fc_w=0.1 * jax.random.normal(ks[6], (len(Ks) * Co, C), jnp.float32),
        fc_b=0.1 * jax.random.normal(ks[7], (1, C), jnp.float32),
    )


if __name__ == "__main__":
    # Small config consistent with the module:
    # embed_num V=50, embed_dim D=32, kernel_num Co=8, kernel_sizes Ks=(3,4,5), class_num C=4
    N, L = 2, 16
    V, D, Co, C = 50, 32, 8, 4
    Ks = (3, 4, 5)

    key = jax.random.PRNGKey(0)
    pkey, tkey = jax.random.split(key)
    params = init_params(pkey, V, D, Co, Ks, C)
    tokens = jax.random.randint(tkey, (N, L), 0, V, dtype=jnp.int32)

    logits = ls_cnn_forward(tokens, params, Ks)
    logits = jax.block_until_ready(logits)

    ref = ls_cnn_reference(tokens, params, Ks)
    assert logits.shape == (N, C)
    # bf16 MXU operands (f32 accumulation) vs. pure-f32 reference.
    assert jnp.allclose(logits, ref, atol=2e-2, rtol=2e-2), (logits, ref)

    print("KERNEL_OK")
</pallas_src>

<mosaic_0001>
module attributes {stable_mosaic.version = 11 : i64} {
  func.func @_ls_cnn_kernel(%arg0: i32, %arg1: memref<8x20xi32, #tpu.memory_space<vmem>>, %arg2: memref<128x32xbf16, #tpu.memory_space<vmem>>, %arg3: memref<160x128xbf16, #tpu.memory_space<vmem>>, %arg4: memref<1x128xf32, #tpu.memory_space<vmem>>, %arg5: memref<16x128xf32, #tpu.memory_space<vmem>>, %arg6: memref<128x128xbf16, #tpu.memory_space<vmem>>, %arg7: memref<1x128xf32, #tpu.memory_space<vmem>>, %arg8: memref<8x128xf32, #tpu.memory_space<vmem>>) attributes {dimension_semantics = [#tpu.dimension_semantics<parallel>], iteration_bounds = array<i64: 1>, scalar_prefetch = 0 : i64, scratch_operands = 0 : i64, tpu.core_type = #tpu.core_type<tc>, window_params = [{transform_indices = @transform_0, window_bounds = array<i64: 8, 20>}, {pipeline_mode = #tpu.pipeline_mode<synchronous>, transform_indices = @transform_1, window_bounds = array<i64: 128, 32>}, {pipeline_mode = #tpu.pipeline_mode<synchronous>, transform_indices = @transform_2, window_bounds = array<i64: 160, 128>}, {pipeline_mode = #tpu.pipeline_mode<synchronous>, transform_indices = @transform_3, window_bounds = array<i64: 1, 128>}, {pipeline_mode = #tpu.pipeline_mode<synchronous>, transform_indices = @transform_4, window_bounds = array<i64: 16, 128>}, {pipeline_mode = #tpu.pipeline_mode<synchronous>, transform_indices = @transform_5, window_bounds = array<i64: 128, 128>}, {pipeline_mode = #tpu.pipeline_mode<synchronous>, transform_indices = @transform_6, window_bounds = array<i64: 1, 128>}, {transform_indices = @transform_7, window_bounds = array<i64: 8, 128>}]} {
    %c0 = arith.constant 0 : index
    %c0_0 = arith.constant 0 : index
    %0 = vector.load %arg1[%c0, %c0_0] : memref<8x20xi32, #tpu.memory_space<vmem>>, vector<8x20xi32>
    %1 = tpu.iota {dimensions = array<i32: 2>} : vector<8x20x128xi32>
    %2 = vector.shape_cast %0 : vector<8x20xi32> to vector<8x20x1xi32>
    %3 = vector.broadcast %2 : vector<8x20x1xi32> to vector<8x20x128xi32>
    %4 = arith.cmpi eq, %3, %1 : vector<8x20x128xi32>
    %5 = arith.extui %4 : vector<8x20x128xi1> to vector<8x20x128xi32>
    %6 = arith.sitofp %5 : vector<8x20x128xi32> to vector<8x20x128xf32>
    %7 = arith.truncf %6 : vector<8x20x128xf32> to vector<8x20x128xbf16>
    %8 = vector.shape_cast %7 : vector<8x20x128xbf16> to vector<160x128xbf16>
    %c0_1 = arith.constant 0 : index
    %c0_2 = arith.constant 0 : index
    %9 = vector.load %arg2[%c0_1, %c0_2] : memref<128x32xbf16, #tpu.memory_space<vmem>>, vector<128x32xbf16>
    %cst = arith.constant dense<0.000000e+00> : vector<160x32xf32>
    %10 = tpu.matmul %8, %9, %cst {dimension_numbers = #tpu.dot_dimension_numbers<[1], [0], [0], [1], [0, 0, 1, 1], [], []>} : vector<160x128xbf16>, vector<128x32xbf16>, vector<160x32xf32> -> vector<160x32xf32>
    %11 = arith.truncf %10 : vector<160x32xf32> to vector<160x32xbf16>
    %12 = vector.shape_cast %11 : vector<160x32xbf16> to vector<8x20x32xbf16>
    %13 = vector.extract_strided_slice %12 {offsets = [0, 0, 0], sizes = [8, 16, 32], strides = [1, 1, 1]} : vector<8x20x32xbf16> to vector<8x16x32xbf16>
    %14 = vector.shape_cast %13 : vector<8x16x32xbf16> to vector<128x32xbf16>
    %15 = vector.extract_strided_slice %12 {offsets = [0, 1, 0], sizes = [8, 16, 32], strides = [1, 1, 1]} : vector<8x20x32xbf16> to vector<8x16x32xbf16>
    %16 = vector.shape_cast %15 : vector<8x16x32xbf16> to vector<128x32xbf16>
    %17 = vector.extract_strided_slice %12 {offsets = [0, 2, 0], sizes = [8, 16, 32], strides = [1, 1, 1]} : vector<8x20x32xbf16> to vector<8x16x32xbf16>
    %18 = vector.shape_cast %17 : vector<8x16x32xbf16> to vector<128x32xbf16>
    %19 = vector.extract_strided_slice %12 {offsets = [0, 3, 0], sizes = [8, 16, 32], strides = [1, 1, 1]} : vector<8x20x32xbf16> to vector<8x16x32xbf16>
    %20 = vector.shape_cast %19 : vector<8x16x32xbf16> to vector<128x32xbf16>
    %21 = vector.extract_strided_slice %12 {offsets = [0, 4, 0], sizes = [8, 16, 32], strides = [1, 1, 1]} : vector<8x20x32xbf16> to vector<8x16x32xbf16>
    %22 = vector.shape_cast %21 : vector<8x16x32xbf16> to vector<128x32xbf16>
    %23 = tpu.concatenate %14, %16, %18, %20, %22 in 1 : vector<128x32xbf16>, vector<128x32xbf16>, vector<128x32xbf16>, vector<128x32xbf16>, vector<128x32xbf16> -> vector<128x160xbf16>
    %c0_3 = arith.constant 0 : index
    %c0_4 = arith.constant 0 : index
    %24 = vector.load %arg3[%c0_3, %c0_4] : memref<160x128xbf16, #tpu.memory_space<vmem>>, vector<160x128xbf16>
    %cst_5 = arith.constant dense<0.000000e+00> : vector<128x128xf32>
    %25 = tpu.matmul %23, %24, %cst_5 {dimension_numbers = #tpu.dot_dimension_numbers<[1], [0], [0], [1], [0, 0, 1, 1], [], []>} : vector<128x160xbf16>, vector<160x128xbf16>, vector<128x128xf32> -> vector<128x128xf32>
    %c0_6 = arith.constant 0 : index
    %c0_7 = arith.constant 0 : index
    %26 = vector.load %arg4[%c0_6, %c0_7] : memref<1x128xf32, #tpu.memory_space<vmem>>, vector<1x128xf32>
    %27 = vector.broadcast %26 : vector<1x128xf32> to vector<128x128xf32>
    %28 = arith.addf %25, %27 : vector<128x128xf32>
    %cst_8 = arith.constant 0.000000e+00 : f32
    %29 = vector.broadcast %cst_8 : f32 to vector<128x128xf32>
    %30 = arith.maximumf %28, %29 : vector<128x128xf32>
    %31 = vector.shape_cast %30 : vector<128x128xf32> to vector<8x16x128xf32>
    %c0_9 = arith.constant 0 : index
    %c0_10 = arith.constant 0 : index
    %32 = vector.load %arg5[%c0_9, %c0_10] : memref<16x128xf32, #tpu.memory_space<vmem>>, vector<16x128xf32>
    %33 = vector.shape_cast %32 : vector<16x128xf32> to vector<1x16x128xf32>
    %34 = vector.broadcast %33 : vector<1x16x128xf32> to vector<8x16x128xf32>
    %35 = arith.mulf %31, %34 : vector<8x16x128xf32>
    %cst_11 = arith.constant dense<0xFF800000> : vector<8x128xf32>
    %36 = vector.multi_reduction <maximumf>, %35, %cst_11 [1] : vector<8x16x128xf32> to vector<8x128xf32>
    %37 = arith.truncf %36 : vector<8x128xf32> to vector<8x128xbf16>
    %c0_12 = arith.constant 0 : index
    %c0_13 = arith.constant 0 : index
    %38 = vector.load %arg6[%c0_12, %c0_13] : memref<128x128xbf16, #tpu.memory_space<vmem>>, vector<128x128xbf16>
    %cst_14 = arith.constant dense<0.000000e+00> : vector<8x128xf32>
    %39 = tpu.matmul %37, %38, %cst_14 {dimension_numbers = #tpu.dot_dimension_numbers<[1], [0], [0], [1], [0, 0, 1, 1], [], []>} : vector<8x128xbf16>, vector<128x128xbf16>, vector<8x128xf32> -> vector<8x128xf32>
    %c0_15 = arith.constant 0 : index
    %c0_16 = arith.constant 0 : index
    %40 = vector.load %arg7[%c0_15, %c0_16] : memref<1x128xf32, #tpu.memory_space<vmem>>, vector<1x128xf32>
    %41 = vector.broadcast %40 : vector<1x128xf32> to vector<8x128xf32>
    %42 = arith.addf %39, %41 : vector<8x128xf32>
    %c0_17 = arith.constant 0 : index
    %c0_18 = arith.constant 0 : index
    %43 = vector.load %arg8[%c0_17, %c0_18] : memref<8x128xf32, #tpu.memory_space<vmem>>, vector<8x128xf32>
    tpu.vector_store %arg8[%c0_17, %c0_18], %42 {strides = array<i32>} : memref<8x128xf32, #tpu.memory_space<vmem>>, vector<8x128xf32>,
    return
  }
  func.func @transform_0(%arg0: i32) -> (i32, i32) {
    %c0_i32 = arith.constant 0 : i32
    %c0_i32_0 = arith.constant 0 : i32
    return %arg0, %c0_i32 : i32, i32
  }
  func.func @transform_1(%arg0: i32) -> (i32, i32) {
    %c0_i32 = arith.constant 0 : i32
    %c0_i32_0 = arith.constant 0 : i32
    %c0_i32_1 = arith.constant 0 : i32
    return %c0_i32, %c0_i32_0 : i32, i32
  }
  func.func @transform_2(%arg0: i32) -> (i32, i32) {
    %c0_i32 = arith.constant 0 : i32
    %c0_i32_0 = arith.constant 0 : i32
    %c0_i32_1 = arith.constant 0 : i32
    return %c0_i32, %c0_i32_0 : i32, i32
  }
  func.func @transform_3(%arg0: i32) -> (i32, i32) {
    %c0_i32 = arith.constant 0 : i32
    %c0_i32_0 = arith.constant 0 : i32
    %c0_i32_1 = arith.constant 0 : i32
    return %c0_i32, %c0_i32_0 : i32, i32
  }
  func.func @transform_4(%arg0: i32) -> (i32, i32) {
    %c0_i32 = arith.constant 0 : i32
    %c0_i32_0 = arith.constant 0 : i32
    %c0_i32_1 = arith.constant 0 : i32
    return %c0_i32, %c0_i32_0 : i32, i32
  }
  func.func @transform_5(%arg0: i32) -> (i32, i32) {
    %c0_i32 = arith.constant 0 : i32
    %c0_i32_0 = arith.constant 0 : i32
    %c0_i32_1 = arith.constant 0 : i32
    return %c0_i32, %c0_i32_0 : i32, i32
  }
  func.func @transform_6(%arg0: i32) -> (i32, i32) {
    %c0_i32 = arith.constant 0 : i32
    %c0_i32_0 = arith.constant 0 : i32
    %c0_i32_1 = arith.constant 0 : i32
    return %c0_i32, %c0_i32_0 : i32, i32
  }
  func.func @transform_7(%arg0: i32) -> (i32, i32) {
    %c0_i32 = arith.constant 0 : i32
    %c0_i32_0 = arith.constant 0 : i32
    return %arg0, %c0_i32 : i32, i32
  }
}

</mosaic_0001>

<bundles_post_ra>
// kernel: tpu_custom_call.1
= control target key start
LH: loop header
LB: loop body
LE: loop exit
PB: predicated region body
PF: predicated region fallthrough
CT: control target
= control target key end

     0   :  { %12 = vsyncpa [#allocation3], 0  ;;  %s4420_s0 = inlined_call_operand.hbm [shape: s32[8,20], index: 0, kind: input, shape index: {}]   ;;  %s4421_s1 = inlined_call_operand.vmem [shape: bf16[128,32], index: 1, kind: input, shape index: {}]   ;;  %s4422_s2 = inlined_call_operand.vmem [shape: bf16[160,128], index: 2, kind: input, shape index: {}]   ;;  %s4423_s3 = inlined_call_operand.vmem [shape: f32[1,128], index: 3, kind: input, shape index: {}]   ;;  %s4424_s4 = inlined_call_operand.hbm [shape: f32[16,128], index: 4, kind: input, shape index: {}]   ;;  %s4425_s5 = inlined_call_operand.hbm [shape: bf16[128,128], index: 5, kind: input, shape index: {}]   ;;  %s4426_s6 = inlined_call_operand.vmem [shape: f32[1,128], index: 6, kind: input, shape index: {}]   ;;  %s4427_s7 = inlined_call_operand.hbm [shape: f32[8,128], index: 7, kind: output, shape index: {}]  }
   0x1   :  { %13 = vsyncpa [#allocation6], 0 }
   0x2   :  { %14 = vsyncpa [#allocation4], 0  ;;  %s3226_s24 = smov [#allocation5]  }
   0x3   :  { %s36_s25 = sshll.u32 %s3226_s24, 4  ;;  %s37_s25 = int_to_ptr.vmem [resolvable:$true] %s36_s25 }
   0x4   :  { %s3148_s26 = scalar_lea.vmem %s37_s25, 256  ;;  %p3153_p1 = scmp.lt.s32.totalorder %s37_s25, %s37_s25 }
   0x5   :  { %p3149_p0 = scmp.ne.s32.totalorder %s37_s25, %s3148_s26  ;;  %p3154_p2 = scmp.lt.s32.totalorder %s3148_s26, %s3148_s26 }
   0x7   :  { %p3155_p3 = por %p3154_p2, %p3153_p1 }
   0x9   :  { %p3156_p4 = pnand %p3155_p3, %p3149_p0 }
   0xb   :  { %3159 = shalt.err (!%p3156_p4)
}
   0xc   :  { %s3227_s27 = smov 128   ;;  %s3228_s28 = smov 8  }
   0xd   :  { %42 = dma.hbm_to_vmem [thread:$0]  %s4424_s4, 256, %s37_s25, [#allocation6], %s3227_s27, %s3227_s27, %s3228_s28  }
   0xe   :  { %s3229_s8 = smov [#allocation2]   ;;  %s3230_s10 = smov [#allocation7]  }
   0xf   :  { %s21_s9 = sshll.u32 %s3229_s8, 4  ;;  %s48_s11 = sshll.u32 %s3230_s10, 4  ;;  %s22_s9 = int_to_ptr.vmem [resolvable:$true] %s21_s9  ;;  %s49_s11 = int_to_ptr.vmem [resolvable:$true] %s48_s11 }
  0x10   :  { %s3168_s12 = scalar_lea.vmem %s22_s9, 128  ;;  %p3173_p6 = scmp.lt.s32.totalorder %s22_s9, %s22_s9 }
  0x11   :  { %p3169_p5 = scmp.ne.s32.totalorder %s22_s9, %s3168_s12  ;;  %p3174_p7 = scmp.lt.s32.totalorder %s3168_s12, %s3168_s12 }
  0x13   :  { %p3175_p8 = por %p3174_p7, %p3173_p6 }
  0x15   :  { %p3176_p9 = pnand %p3175_p8, %p3169_p5 }
  0x17   :  { %3179 = shalt.err (!%p3176_p9)
}
  0x18   :  { %24 = dma.hbm_to_vmem [thread:$0]  %s4420_s0, 128, %s22_s9, [#allocation3]  }
  0x19   :  { %s3188_s15 = scalar_lea.vmem %s49_s11, 1024  ;;  %p3193_p11 = scmp.lt.s32.totalorder %s49_s11, %s49_s11 }
  0x1a   :  { %p3189_p10 = scmp.ne.s32.totalorder %s49_s11, %s3188_s15  ;;  %p3194_p12 = scmp.lt.s32.totalorder %s3188_s15, %s3188_s15 }
  0x1c   :  { %p3195_p13 = por %p3194_p12, %p3193_p11 }
  0x1e   :  { %p3196_p0 = pnand %p3195_p13, %p3189_p10 }
  0x20   :  { %3199 = shalt.err (!%p3196_p0)
}
  0x21   :  { %s3231_s4 = smov 64   ;;  %s3232_s16 = smov 4  }
  0x22   :  { %54 = dma.hbm_to_vmem [thread:$0]  %s4425_s5, 1024, %s49_s11, [#allocation6], %s3231_s4, %s3231_s4, %s3232_s16  }
  0x23   :  { %3220 = dma.done.wait [#allocation3], 128  }
  0x24   :  { %3221 = vsyncadd [#allocation3], 4294967168 }
  0x25   :  { %3222 = dma.done.wait [#allocation6], 1280  }
  0x26   :  { %3223 = vsyncadd [#allocation6], 4294966016  ;;  %v68_v0 = vlaneseq  ;;  %v67_v4 = vld [vmem:[#allocation2] sm:$0xff]  ;;  %v3114_v7 = vld [vmem:[%s4421_s1 + $0x38] sm:$0xff]   ;;  %v4428_v25 = vmov 0.0   ;;  %s3236_s10 = smov 96  }
  0x27   :  { %v3115_v8 = vld [vmem:[%s4421_s1 + $0x30] sm:$0xff]   ;;  %3044 = vmatprep.subr.bf16.mxu0 %v3114_v7  ;;  %v3116_v10 = vld [vmem:[%s4421_s1 + $0x28] sm:$0xff]   ;;  %v3117_v14 = vld [vmem:[%s4421_s1 + $0x20] sm:$0xff]   ;;  %v3234_v28 = vmov 1983009808   ;;  %s3239_s30 = smov [#allocation8]  }
  0x28   :  { %v3292_v1 = vshrl.u32 %v68_v0, 7  ;;  %3045 = vmatpush3.bf16.msra.mxu0 %v3114_v7  ;;  %v3118_v15 = vld [vmem:[%s4421_s1 + $0x18] sm:$0xff]   ;;  %v3119_v17 = vld [vmem:[%s4421_s1 + $0x10] sm:$0xff]   ;;  %v3120_v19 = vld [vmem:[%s4421_s1 + $0x8] sm:$0xff]   ;;  %v296_v29 = vunpack.c.l.s4 %v3234_v28  ;;  %v3328_v30 = vand.u32 127, %v68_v0  ;;  %s2913_s8 = sshll.u32 %s3239_s30, 4  ;;  %s2914_s8 = int_to_ptr.vmem [resolvable:$true] %s2913_s8 }
  0x29   :  { %3046 = vmatprep.subr.bf16.mxu0 %v3115_v8  ;;  %v3121_v21 = vld [vmem:[%s4421_s1] sm:$0xff]   ;;  %s3235_s1 = smov 32   ;;  %s3200_s9 = scalar_lea.vmem %s2914_s8, 128 }
  0x2a   :  { %v87_v2 = vsub.s32 1, %v3292_v1  ;;  %v72_v3 = vsub.s32 0, %v3292_v1  ;;  %v102_v9 = vsub.s32 2, %v3292_v1  ;;  %v117_v12 = vsub.s32 3, %v3292_v1  ;;  %p3201_p1 = scmp.ne.s32.totalorder %s2914_s8, %s3200_s9  ;;  %p3205_p2 = scmp.lt.s32.totalorder %s2914_s8, %s2914_s8 }
  0x2b   :  { %v132_v13 = vsub.s32 4, %v3292_v1  ;;  %v147_v20 = vsub.s32 5, %v3292_v1  ;;  %v162_v23 = vsub.s32 6, %v3292_v1  ;;  %v177_v26 = vsub.s32 7, %v3292_v1  ;;  %p3206_p3 = scmp.lt.s32.totalorder %s3200_s9, %s3200_s9 }
  0x2c   :  { %v88_v5 = vrot.slane %v67_v4, %v87_v2  ;;  %v73_v6 = vrot.slane %v67_v4, %v72_v3  ;;  %v103_v11 = vrot.slane %v67_v4, %v102_v9  ;;  %3047 = vmatpush3.bf16.msra.mxu0 %v3115_v8  ;;  %v118_v16 = vrot.slane %v67_v4, %v117_v12 }
  0x2d   :  { %3048 = vmatprep.subr.bf16.mxu0 %v3116_v10  ;;  %v133_v18 = vrot.slane %v67_v4, %v132_v13  ;;  %v148_v22 = vrot.slane %v67_v4, %v147_v20  ;;  %v163_v24 = vrot.slane %v67_v4, %v162_v23  ;;  %v178_v27 = vrot.slane %v67_v4, %v177_v26  ;;  %p3207_p4 = por %p3206_p3, %p3205_p2 }
  0x2e   :  { %90 = vbcast.lane.b32.xlu1 %v88_v5, 256  ;;  %75 = vbcast.lane.b32.xlu0 %v73_v6, 256  ;;  %v297_v33 = vunpack.c.0.s8 %v296_v29 }
  0x2f   :  { %p3208_p5 = pnand %p3207_p4, %p3201_p1 }
  0x30   :  { %3049 = vmatpush3.bf16.msra.mxu0 %v3116_v10  ;;  %v3334_v37 = vsub.s32 %v297_v33, %v3292_v1 }
  0x31   :  { %3050 = vmatprep.subr.bf16.mxu0 %v3117_v14 }
  0x32   :  { %94 = vbcast.lane.b32.xlu1 %v88_v5, 264  ;;  %79 = vbcast.lane.b32.xlu0 %v73_v6, 264 }
  0x34   :  { %3051 = vmatpush3.bf16.msra.mxu0 %v3117_v14 }
  0x35   :  { %3052 = vmatprep.subr.bf16.mxu0 %v3118_v15 }
  0x36   :  { %105 = vbcast.lane.b32.xlu1 %v103_v11, 256  ;;  %83 = vbcast.lane.b32.xlu0 %v73_v6, 272 }
  0x38   :  { %3053 = vmatpush3.bf16.msra.mxu0 %v3118_v15 }
  0x39   :  { %3054 = vmatprep.subr.bf16.mxu0 %v3119_v17 }
  0x3a   :  { %98 = vbcast.lane.b32.xlu1 %v88_v5, 272  ;;  %109 = vbcast.lane.b32.xlu0 %v103_v11, 264 }
  0x3c   :  { %3055 = vmatpush3.bf16.msra.mxu0 %v3119_v17 }
  0x3d   :  { %3056 = vmatprep.subr.bf16.mxu0 %v3120_v19 }
  0x3e   :  { %120 = vbcast.lane.b32.xlu1 %v118_v16, 256  ;;  %113 = vbcast.lane.b32.xlu0 %v103_v11, 272 }
  0x40   :  { %3057 = vmatpush3.bf16.msra.mxu0 %v3120_v19 }
  0x41   :  { %3058 = vmatprep.subr.bf16.mxu0 %v3121_v21 }
  0x42   :  { %135 = vbcast.lane.b32.xlu1 %v133_v18, 256  ;;  %124 = vbcast.lane.b32.xlu0 %v118_v16, 264 }
  0x44   :  { %3059 = vmatpush3.bf16.msra.mxu0 %v3121_v21 }
  0x45   :  { %3080 = vmatprep.subr.bf16.mxu0 %v4428_v25 }
  0x46   :  { %128 = vbcast.lane.b32.xlu1 %v118_v16, 272  ;;  %139 = vbcast.lane.b32.xlu0 %v133_v18, 264 }
  0x4a   :  { %150 = vbcast.lane.b32.xlu0 %v148_v22, 256  ;;  %154 = vbcast.lane.b32.xlu1 %v148_v22, 264 }
  0x4e   :  { %165 = vbcast.lane.b32.xlu0 %v163_v24, 256  ;;  %169 = vbcast.lane.b32.xlu1 %v163_v24, 264 }
  0x52   :  { %143 = vbcast.lane.b32.xlu0 %v133_v18, 272  ;;  %158 = vbcast.lane.b32.xlu1 %v148_v22, 272 }
  0x56   :  { %180 = vbcast.lane.b32.xlu0 %v178_v27, 256  ;;  %184 = vbcast.lane.b32.xlu1 %v178_v27, 264 }
  0x5a   :  { %173 = vbcast.lane.b32.xlu0 %v163_v24, 272  ;;  %188 = vbcast.lane.b32.xlu1 %v178_v27, 272 }
  0xa0   :  { %v91_v31 = vpop.permute.xlu1 %90  ;;  %v76_v32 = vpop.permute.xlu0 %75 }
  0xa1   :  { %vm193_vm0 = vcmp.eq.s32.totalorder %v91_v31, %v3328_v30  ;;  %vm190_vm1 = vcmp.eq.s32.totalorder %v76_v32, %v3328_v30 }
  0xa2   :  { %v2926_v34 = vsel %vm193_vm0, 1.0, %v4428_v25  ;;  %v2923_v38 = vsel %vm190_vm1, 1.0, %v4428_v25 }
  0xa4   :  { %v95_v35 = vpop.permute.xlu1 %94  ;;  %v80_v36 = vpop.permute.xlu0 %79 }
  0xa5   :  { %vm194_vm2 = vcmp.eq.s32.totalorder %v95_v35, %v3328_v30  ;;  %vm191_vm3 = vcmp.eq.s32.totalorder %v80_v36, %v3328_v30 }
  0xa6   :  { %v2927_v39 = vsel %vm194_vm2, 1.0, %v4428_v25  ;;  %v2924_v40 = vsel %vm191_vm3, 1.0, %v4428_v25 }
  0xa7   :  { %v264_v41 = vpack.c.bf16 %v2927_v39, %v2926_v34  ;;  %v2948_v42 = vpack.c.bf16 %v2927_v39, %v2927_v39  ;;  %v262_v43 = vpack.c.bf16 %v2924_v40, %v2923_v38  ;;  %v2947_v44 = vpack.c.bf16 %v2924_v40, %v2924_v40 }
  0xa8   :  { %v106_v45 = vpop.permute.xlu1 %105  ;;  %v84_v46 = vpop.permute.xlu0 %83 }
  0xa9   :  { %v325_v47 = vrot.slane %v264_v41, %v3334_v37  ;;  %v332_v48 = vrot.slane %v2948_v42, %v3334_v37  ;;  %v301_v49 = vrot.slane %v262_v43, %v3334_v37  ;;  %v308_v50 = vrot.slane %v2947_v44, %v3334_v37 }
  0xaa   :  { %vm196_vm4 = vcmp.eq.s32.totalorder %v106_v45, %v3328_v30  ;;  %vm192_vm5 = vcmp.eq.s32.totalorder %v84_v46, %v3328_v30 }
  0xab   :  { %v333_v51 = vcombine.high %v325_v47, %v325_v47  ;;  %v2925_v52 = vsel %vm192_vm5, 1.0, %v4428_v25  ;;  %v2929_v53 = vsel %vm196_vm4, 1.0, %v4428_v25  ;;  %v309_v57 = vcombine.high %v301_v49, %v301_v49 }
  0xac   :  { %v263_v54 = vpack.c.bf16 %v2925_v52, %v2925_v52  ;;  %v99_v55 = vpop.permute.xlu1 %98  ;;  %v110_v56 = vpop.permute.xlu0 %109  ;;  %v310_v58 = vcombine.high %v308_v50, %v308_v50  ;;  %v334_v8 = vcombine.high %v332_v48, %v332_v48 }
  0xad   :  { %v520_v59 = vcombine.low %v333_v51, %v332_v48  ;;  %vm195_vm6 = vcmp.eq.s32.totalorder %v99_v55, %v3328_v30  ;;  %vm197_vm7 = vcmp.eq.s32.totalorder %v110_v56, %v3328_v30  ;;  %v502_v63 = vcombine.low %v301_v49, %v309_v57 }
  0xae   :  { %v317_v60 = vrot.slane %v263_v54, %v3334_v37  ;;  %v2928_v61 = vsel %vm195_vm6, 1.0, %v4428_v25  ;;  %v2930_v62 = vsel %vm197_vm7, 1.0, %v4428_v25  ;;  %v503_v3 = vcombine.low %v308_v50, %v310_v58 }
  0xaf   :  { %v265_v0 = vpack.c.bf16 %v2928_v61, %v2928_v61  ;;  %v266_v1 = vpack.c.bf16 %v2930_v62, %v2929_v53  ;;  %v2949_v2 = vpack.c.bf16 %v2930_v62, %v2930_v62  ;;  %v510_v7 = vrot.slane %v502_v63, %v3334_v37 }
  0xb0   :  { %v519_v4 = vcombine.low %v317_v60, %v325_v47  ;;  %v121_v5 = vpop.permute.xlu1 %120  ;;  %v114_v6 = vpop.permute.xlu0 %113  ;;  %v517_v11 = vrot.slane %v503_v3, %v3334_v37  ;;  %v534_v13 = vrot.slane %v520_v59, %v3334_v37 }
  0xb1   :  { %v341_v9 = vrot.slane %v265_v0, %v3334_v37  ;;  %v349_v10 = vrot.slane %v266_v1, %v3334_v37  ;;  %vm199_vm8 = vcmp.eq.s32.totalorder %v121_v5, %v3328_v30  ;;  %vm198_vm9 = vcmp.eq.s32.totalorder %v114_v6, %v3328_v30 }
  0xb2   :  { %v527_v12 = vrot.slane %v519_v4, %v3334_v37  ;;  %v356_v14 = vrot.slane %v2949_v2, %v3334_v37  ;;  %v2931_v16 = vsel %vm198_vm9, 1.0, %v4428_v25  ;;  %v2932_v18 = vsel %vm199_vm8, 1.0, %v4428_v25 }
  0xb3   :  { %v357_v15 = vcombine.high %v349_v10, %v349_v10  ;;  %v536_v17 = vcombine.low %v334_v8, %v341_v9  ;;  %v518_v19 = vcombine.low %v510_v7, %v517_v11  ;;  %v267_v24 = vpack.c.bf16 %v2931_v16, %v2931_v16 }
  0xb4   :  { %v136_v20 = vpop.permute.xlu1 %135  ;;  %v125_v21 = vpop.permute.xlu0 %124  ;;  %v535_v22 = vcombine.low %v527_v12, %v534_v13  ;;  %v358_v31 = vcombine.high %v356_v14, %v356_v14  ;;  %vm1392_vm8 = vcmask 1040384   ;;  %vm1393_vm9 = vcmask 1042434  }
  0xb5   :  { %v537_v23 = vcombine.low %v349_v10, %v357_v15  ;;  %vm202_vm10 = vcmp.eq.s32.totalorder %v136_v20, %v3328_v30  ;;  %vm200_vm11 = vcmp.eq.s32.totalorder %v125_v21, %v3328_v30  ;;  %3060 = vmatprep.mubr.bf16.mxu0 %v518_v19  ;;  %v544_v35 = vrot.slane %v536_v17, %v3334_v37 }
  0xb6   :  { %v2933_v26 = vsel %vm200_vm11, 1.0, %v4428_v25  ;;  %3061 = vmatmul.mubr.bf16.vlgmr.msra.gmra.mxu0 %v535_v22  ;;  %v2935_v32 = vsel %vm202_vm10, 1.0, %v4428_v25  ;;  %v365_v39 = vrot.slane %v267_v24, %v3334_v37  ;;  %v553_v45 = vcombine.low %v356_v14, %v358_v31 }
  0xb7   :  { %v268_v27 = vpack.c.bf16 %v2933_v26, %v2932_v18  ;;  %v2950_v28 = vpack.c.bf16 %v2933_v26, %v2933_v26  ;;  %v551_v29 = vrot.slane %v537_v23, %v3334_v37  ;;  %vm1395_vm10 = vcmask 1044484  }
  0xb8   :  { %v129_v33 = vpop.permute.xlu1 %128  ;;  %v140_v34 = vpop.permute.xlu0 %139  ;;  %v561_v3 = vrot.slane %v553_v45, %v3334_v37  ;;  %vm1033_vm11 = vsmask.f32 1280 }
  0xb9   :  { %v373_v36 = vrot.slane %v268_v27, %v3334_v37  ;;  %v380_v38 = vrot.slane %v2950_v28, %v3334_v37  ;;  %vm201_vm12 = vcmp.eq.s32.totalorder %v129_v33, %v3328_v30  ;;  %vm203_vm13 = vcmp.eq.s32.totalorder %v140_v34, %v3328_v30 }
  0xba   :  { %v2934_v40 = vsel %vm201_vm12, 1.0, %v4428_v25  ;;  %v2936_v41 = vsel %vm203_vm13, 1.0, %v4428_v25  ;;  %v552_v42 = vcombine.low %v544_v35, %v551_v29  ;;  %vm1034_vm12 = vsmask.f32 3336 }
  0xbb   :  { %v381_v43 = vcombine.high %v373_v36, %v373_v36  ;;  %v269_v44 = vpack.c.bf16 %v2934_v40, %v2934_v40  ;;  %v554_v46 = vcombine.low %v365_v39, %v373_v36  ;;  %v270_v47 = vpack.c.bf16 %v2936_v41, %v2935_v32 }
  0xbc   :  { %v2951_v48 = vpack.c.bf16 %v2936_v41, %v2936_v41  ;;  %3064 = vmatprep.mubr.bf16.mxu0 %v552_v42  ;;  %v151_v49 = vpop.permute.xlu0 %150  ;;  %v155_v50 = vpop.permute.xlu1 %154  ;;  %v382_v51 = vcombine.high %v380_v38, %v380_v38  ;;  %vm2390_vm13 = vcmask 261120  }
  0xbd   :  { %v389_v52 = vrot.slane %v269_v44, %v3334_v37  ;;  %vm205_vm14 = vcmp.eq.s32.totalorder %v151_v49, %v3328_v30  ;;  %vm206_vm15 = vcmp.eq.s32.totalorder %v155_v50, %v3328_v30  ;;  %v397_v53 = vrot.slane %v270_v47, %v3334_v37 }
  0xbe   :  { %v404_v54 = vrot.slane %v2951_v48, %v3334_v37  ;;  %v2938_v55 = vsel %vm205_vm14, 1.0, %v4428_v25  ;;  %v2939_v56 = vsel %vm206_vm15, 1.0, %v4428_v25  ;;  %v570_v57 = vcombine.low %v381_v43, %v380_v38  ;;  %vm3432_vm14 = vmor %vm1392_vm8, %vm1393_vm9 }
  0xbf   :  { %v272_v58 = vpack.c.bf16 %v2939_v56, %v2938_v55  ;;  %v2952_v59 = vpack.c.bf16 %v2939_v56, %v2939_v56  ;;  %v571_v60 = vcombine.low %v382_v51, %v389_v52  ;;  %v405_v61 = vcombine.high %v397_v53, %v397_v53 }
  0xc0   :  { %v406_v62 = vcombine.high %v404_v54, %v404_v54  ;;  %v166_v63 = vpop.permute.xlu0 %165  ;;  %v170_v0 = vpop.permute.xlu1 %169  ;;  %v568_v1 = vrot.slane %v554_v46, %v3334_v37  ;;  %v578_v15 = vrot.slane %v570_v57, %v3334_v37  ;;  %vm1397_vm15 = vcmask 1046534  }
  0xc1   :  { %v421_v2 = vrot.slane %v272_v58, %v3334_v37  ;;  %vm208_vm0 = vcmp.eq.s32.totalorder %v166_v63, %v3328_v30  ;;  %vm209_vm1 = vcmp.eq.s32.totalorder %v170_v0, %v3328_v30  ;;  %v587_v4 = vcombine.low %v397_v53, %v405_v61 }
  0xc2   :  { %v588_v5 = vcombine.low %v404_v54, %v406_v62  ;;  %v2941_v6 = vsel %vm208_vm0, 1.0, %v4428_v25  ;;  %v2942_v7 = vsel %vm209_vm1, 1.0, %v4428_v25  ;;  %v428_v8 = vrot.slane %v2952_v59, %v3334_v37 }
  0xc3   :  { %v429_v9 = vcombine.high %v421_v2, %v421_v2  ;;  %v274_v10 = vpack.c.bf16 %v2942_v7, %v2941_v6  ;;  %v2953_v11 = vpack.c.bf16 %v2942_v7, %v2942_v7  ;;  %v569_v12 = vcombine.low %v561_v3, %v568_v1 }
  0xc4   :  { %v144_v13 = vpop.permute.xlu0 %143  ;;  %v159_v14 = vpop.permute.xlu1 %158  ;;  %v585_v16 = vrot.slane %v571_v60, %v3334_v37  ;;  %v595_v19 = vrot.slane %v587_v4, %v3334_v37  ;;  %v602_v22 = vrot.slane %v588_v5, %v3334_v37  ;;  %v430_v28 = vcombine.high %v428_v8, %v428_v8 }
  0xc5   :  { %v445_v17 = vrot.slane %v274_v10, %v3334_v37  ;;  %v452_v18 = vrot.slane %v2953_v11, %v3334_v37  ;;  %vm204_vm2 = vcmp.eq.s32.totalorder %v144_v13, %v3328_v30  ;;  %3065 = vmatmul.mubr.bf16.gmra.mxu0 %v569_v12  ;;  %vm207_vm3 = vcmp.eq.s32.totalorder %v159_v14, %v3328_v30 }
  0xc6   :  { %v2937_v20 = vsel %vm204_vm2, 1.0, %v4428_v25  ;;  %v586_v21 = vcombine.low %v578_v15, %v585_v16  ;;  %v605_v23 = vcombine.low %v429_v9, %v428_v8  ;;  %v2940_v27 = vsel %vm207_vm3, 1.0, %v4428_v25  ;;  %vm1396_vm2 = vmor %vm3432_vm14, %vm1395_vm10 }
  0xc7   :  { %v453_v24 = vcombine.high %v445_v17, %v445_v17  ;;  %v271_v26 = vpack.c.bf16 %v2937_v20, %v2937_v20  ;;  %v454_v29 = vcombine.high %v452_v18, %v452_v18  ;;  %v273_v31 = vpack.c.bf16 %v2940_v27, %v2940_v27  ;;  %vm3479_vm3 = vmor %vm1033_vm11, %vm1034_vm12 }
  0xc8   :  { %3068 = vmatprep.mubr.bf16.mxu0 %v586_v21  ;;  %v181_v32 = vpop.permute.xlu0 %180  ;;  %v185_v33 = vpop.permute.xlu1 %184  ;;  %v603_v39 = vcombine.low %v595_v19, %v602_v22  ;;  %v619_v42 = vrot.slane %v605_v23, %v3334_v37  ;;  %vm1036_vm0 = vsmask.f32 5392  ;;  %vm1038_vm1 = vsmask.f32 7448 }
  0xc9   :  { %v622_v34 = vcombine.low %v445_v17, %v453_v24  ;;  %v413_v35 = vrot.slane %v271_v26, %v3334_v37  ;;  %vm211_vm4 = vcmp.eq.s32.totalorder %v181_v32, %v3328_v30  ;;  %v437_v36 = vrot.slane %v273_v31, %v3334_v37 }
  0xca   :  { %v2944_v38 = vsel %vm211_vm4, 1.0, %v4428_v25  ;;  %vm212_vm5 = vcmp.eq.s32.totalorder %v185_v33, %v3328_v30  ;;  %v638_v43 = vcombine.low %v452_v18, %v454_v29  ;;  %vm1503_vm4 = vsmask.f32 256 }
  0xcb   :  { %v604_v40 = vcombine.low %v413_v35, %v421_v2  ;;  %v2945_v41 = vsel %vm212_vm5, 1.0, %v4428_v25  ;;  %v621_v44 = vcombine.low %v430_v28, %v437_v36  ;;  %v636_v50 = vrot.slane %v622_v34, %v3334_v37 }
  0xcc   :  { %v276_v45 = vpack.c.bf16 %v2945_v41, %v2944_v38  ;;  %v2954_v46 = vpack.c.bf16 %v2945_v41, %v2945_v41  ;;  %v174_v47 = vpop.permute.xlu0 %173  ;;  %v189_v48 = vpop.permute.xlu1 %188  ;;  %v646_v2 = vrot.slane %v638_v43, %v3334_v37  ;;  %vm1504_vm5 = vsmask.f32 2312 }
  0xcd   :  { %vm210_vm6 = vcmp.eq.s32.totalorder %v174_v47, %v3328_v30  ;;  %vm213_vm7 = vcmp.eq.s32.totalorder %v189_v48, %v3328_v30  ;;  %v612_v49 = vrot.slane %v604_v40, %v3334_v37  ;;  %3069 = vmatmul.mubr.bf16.gmra.mxu0 %v603_v39  ;;  %v629_v58 = vrot.slane %v621_v44, %v3334_v37  ;;  %vm1505_vm14 = vmor %vm1503_vm4, %vm1504_vm5 }
  0xce   :  { %v469_v51 = vrot.slane %v276_v45, %v3334_v37  ;;  %v476_v52 = vrot.slane %v2954_v46, %v3334_v37  ;;  %v2943_v53 = vsel %vm210_vm6, 1.0, %v4428_v25  ;;  %v2946_v54 = vsel %vm213_vm7, 1.0, %v4428_v25  ;;  %vm3484_vm6 = vmor %vm1396_vm2, %vm1397_vm15 }
  0xcf   :  { %v275_v55 = vpack.c.bf16 %v2943_v53, %v2943_v53  ;;  %v277_v56 = vpack.c.bf16 %v2946_v54, %v2946_v54  ;;  %v620_v57 = vcombine.low %v612_v49, %v619_v42  ;;  %v637_v63 = vcombine.low %v629_v58, %v636_v50  ;;  %vm3500_vm7 = vmor %vm3479_vm3, %vm1036_vm0 }
  0xd0   :  { %v477_v59 = vcombine.high %v469_v51, %v469_v51  ;;  %v478_v30 = vcombine.high %v476_v52, %v476_v52  ;;  %vm1506_vm8 = vsmask.f32 4368  ;;  %vm3519_vm11 = vmor %vm3500_vm7, %vm1038_vm1  ;;  %vm1508_vm12 = vsmask.f32 6424 }
  0xd1   :  { %v461_v60 = vrot.slane %v275_v55, %v3334_v37  ;;  %v485_v61 = vrot.slane %v277_v56, %v3334_v37  ;;  %3072 = vmatprep.mubr.bf16.mxu0 %v620_v57  ;;  %vm3567_vm0 = vmor %vm1505_vm14, %vm1506_vm8  ;;  %vm2415_vm2 = vcmask 523264   ;;  %vm2432_vm3 = vcmask 785408  }
  0xd2   :  { %v655_v62 = vcombine.low %v477_v59, %v476_v52  ;;  %vm3591_vm1 = vmor %vm3567_vm0, %vm1508_vm12  ;;  %vm2802_vm4 = vcmask 1041409   ;;  %vm2810_vm5 = vcmask 1045509  }
  0xd3   :  { %v639_v0 = vcombine.low %v461_v60, %v469_v51  ;;  %v656_v1 = vcombine.low %v478_v30, %v485_v61 }
  0xd4   :  { %v663_v4 = vrot.slane %v655_v62, %v3334_v37 }
  0xd5   :  { %v653_v3 = vrot.slane %v639_v0, %v3334_v37  ;;  %3073 = vmatmul.mubr.bf16.gmra.mxu0 %v637_v63  ;;  %v670_v5 = vrot.slane %v656_v1, %v3334_v37 }
  0xd7   :  { %v654_v6 = vcombine.low %v646_v2, %v653_v3  ;;  %v671_v7 = vcombine.low %v663_v4, %v670_v5 }
  0xd9   :  { %3076 = vmatprep.mubr.bf16.mxu0 %v654_v6 }
  0xdd   :  { %3077 = vmatmul.mubr.bf16.gmra.mxu0 %v671_v7 }
 0x176   :  { %v3062_v8 = vpop.f32.mrf.mxu0 }
 0x178   :  { %v764_v9 = vpop.f32.mrf.mxu0 }
 0x17a   :  { %v3063_v10 = vpop.f32.mrf.mxu0 }
 0x17b   :  { %v844_v11 = vpack.c.bf16 %v3063_v10, %v3062_v8  ;;  %v2964_v12 = vpack.c.bf16 %v3063_v10, %v3063_v10 }
 0x17c   :  { %v767_v13 = vpop.f32.mrf.mxu0 }
 0x17d   :  { %v3426_v14 = vrot.slane %v844_v11, %v3334_v37  ;;  %v3429_v15 = vrot.slane %v2964_v12, %v3334_v37  ;;  %v843_v16 = vpack.c.bf16 %v767_v13, %v764_v9  ;;  %v2963_v17 = vpack.c.bf16 %v767_v13, %v767_v13 }
 0x17f   :  { %4463 = vst [vmem:[#allocation12_spill] sm:$0xff] %v3429_v15  ;;  %v3438_v19 = vcombine.high %v3426_v14, %v3426_v14  ;;  %v3442_v20 = vcombine.high %v3429_v15, %v3429_v15  ;;  %v3445_v21 = vrot.slane %v843_v16, %v3334_v37  ;;  %v3448_v22 = vrot.slane %v2963_v17, %v3334_v37 }
 0x180   :  { %v1410_v23 = vrot.slane %v3426_v14, 7  ;;  %v1080_v24 = vshll.u32 %v3426_v14, 16  ;;  %v1524_v26 = vshrl.u32 %v3426_v14, 16  ;;  %v1414_v27 = vrot.slane %v3429_v15, 7 }
 0x181   :  { %4466 = vst [vmem:[#allocation13_spill] sm:$0xff] %v3438_v19  ;;  %4467 = vst [vmem:[#allocation14_spill] sm:$0xff] %v3442_v20  ;;  %v3456_v28 = vcombine.high %v3445_v21, %v3445_v21  ;;  %v1041_v29 = vshrl.u32 %v3445_v21, 16  ;;  %v1044_v31 = vshll.u32 %v3445_v21, 16  ;;  %v3462_v32 = vcombine.high %v3448_v22, %v3448_v22 }
 0x182   :  { %v2973_v33 = vrot.slane %v3445_v21, 9  ;;  %v1404_v34 = vrot.slane %v3448_v22, 7  ;;  %v1060_v35 = vshll.u32 %v3448_v22, 16  ;;  %v1064_v36 = vshrl.u32 %v3448_v22, 16 }
 0x183   :  { %v2254_v38 = vcombine.low %v3456_v28, %v3448_v22  ;;  %v2255_v39 = vcombine.low %v3462_v32, %v3426_v14  ;;  %v1401_v40 = vrot.slane %v3456_v28, 7  ;;  %v1407_v41 = vrot.slane %v3462_v32, 7 }
 0x184   :  { %v1406_v44 = vrot.slane %v1404_v34, 2  ;;  %v1043_v45 = vrot.slane %v1041_v29, 6  ;;  %v1046_v46 = vrot.slane %v1044_v31, 7  ;;  %v1050_v47 = vshll.u32 %v3456_v28, 16 }
 0x185   :  { %v3066_v48 = vpop.f32.mrf.mxu0  ;;  %v2262_v49 = vrot.slane %v2254_v38, %v3334_v37  ;;  %v2269_v50 = vrot.slane %v2255_v39, %v3334_v37  ;;  %v1402_v51 = vsel %vm3484_vm6, %v2973_v33, %v1401_v40  ;;  %v1403_v52 = vrot.slane %v1401_v40, 2 }
 0x186   :  { %v1408_v53 = vsel %vm3484_vm6, %v1406_v44, %v1407_v41  ;;  %v1409_v54 = vrot.slane %v1407_v41, 2  ;;  %v1047_v56 = vor.u32 %v1046_v46, %v1043_v45  ;;  %v1052_v57 = vrot.slane %v1050_v47, 7 }
 0x187   :  { %v780_v58 = vpop.f32.mrf.mxu0  ;;  %v2270_v59 = vcombine.low %v2262_v49, %v2269_v50  ;;  %v1405_v30 = vsel %vm3484_vm6, %v1403_v52, %v1404_v34  ;;  %v1054_v60 = vshrl.u32 %v3456_v28, 16  ;;  %v1062_v61 = vrot.slane %v1060_v35, 7 }
 0x188   :  { %v1411_v62 = vsel %vm3484_vm6, %v1409_v54, %v1410_v23  ;;  %v1950_v63 = vcombine.low %v1402_v51, %v1405_v30  ;;  %v1048_v0 = vrot.slane %v1047_v56, 2  ;;  %v1066_v1 = vrot.slane %v1064_v36, 6 }
 0x189   :  { %v3067_v2 = vpop.f32.mrf.mxu0  ;;  %3000 = vmatprep.mubr.msk.bf16.mxu1 %vm2390_vm13, %v2270_v59  ;;  %v1951_v3 = vcombine.low %v1408_v53, %v1411_v62  ;;  %v1056_v5 = vrot.slane %v1054_v60, 6  ;;  %v1070_v6 = vshll.u32 %v3462_v32, 16  ;;  %v1074_v7 = vshrl.u32 %v3462_v32, 16 }
 0x18a   :  { %v846_v8 = vpack.c.bf16 %v3067_v2, %v3066_v48  ;;  %v2966_v9 = vpack.c.bf16 %v3067_v2, %v3067_v2  ;;  %v1958_v10 = vrot.slane %v1950_v63, %v3334_v37  ;;  %v1053_v11 = vsel %vm3519_vm11, %v1048_v0, %v1052_v57 }
 0x18b   :  { %v783_v12 = vpop.f32.mrf.mxu0  ;;  %v1965_v13 = vrot.slane %v1951_v3, %v3334_v37  ;;  %v1057_v16 = vor.u32 %v1056_v5, %v1052_v57  ;;  %v1067_v17 = vor.u32 %v1066_v1, %v1062_v61  ;;  %v1072_v18 = vrot.slane %v1070_v6, 7 }
 0x18c   :  { %v3532_v23 = vrot.slane %v846_v8, %v3334_v37  ;;  %v3535_v31 = vrot.slane %v2966_v9, %v3334_v37  ;;  %v845_v33 = vpack.c.bf16 %v783_v12, %v780_v58  ;;  %v2965_v34 = vpack.c.bf16 %v783_v12, %v783_v12 }
 0x18d   :  { %v3070_v38 = vpop.f32.mrf.mxu0  ;;  %v1966_v39 = vcombine.low %v1958_v10, %v1965_v13  ;;  %v1058_v40 = vrot.slane %v1057_v16, 2  ;;  %v1068_v41 = vrot.slane %v1067_v17, 2  ;;  %v1076_v42 = vrot.slane %v1074_v7, 6 }
 0x18e   :  { %4476 = vst [vmem:[#allocation15_spill] sm:$0xff] %v3532_v23  ;;  %4477 = vst [vmem:[#allocation16_spill] sm:$0xff] %v3535_v31  ;;  %v3539_v44 = vcombine.high %v3532_v23, %v3532_v23  ;;  %v3543_v45 = vcombine.high %v3535_v31, %v3535_v31  ;;  %v3546_v46 = vrot.slane %v845_v33, %v3334_v37  ;;  %v1082_v53 = vrot.slane %v1080_v24, 7 }
 0x18f   :  { %v3549_v48 = vrot.slane %v2965_v34, %v3334_v37  ;;  %v796_v49 = vpop.f32.mrf.mxu0  ;;  %2086 = vrot.lane.b32.xlu1 %v1966_v39, %s3231_s4  ;;  %v1063_v50 = vsel %vm3519_vm11, %v1058_v40, %v1062_v61  ;;  %v1073_v51 = vsel %vm3519_vm11, %v1068_v41, %v1072_v18  ;;  %v1077_v52 = vor.u32 %v1076_v42, %v1072_v18 }
 0x190   :  { %4478 = vst [vmem:[#allocation17_spill] sm:$0xff] %v3539_v44  ;;  %v1798_v57 = vcombine.low %v1053_v11, %v1063_v50  ;;  %v2981_v61 = vrot.slane %v1041_v29, 9  ;;  %v1512_v62 = vrot.slane %v1054_v60, 7  ;;  %v1516_v63 = vrot.slane %v1064_v36, 7 }
 0x191   :  { %4479 = vst [vmem:[#allocation18_spill] sm:$0xff] %v3549_v48  ;;  %v3562_v54 = vcombine.high %v3549_v48, %v3549_v48  ;;  %v4430_v55 = vshrl.u32 %v3549_v48, 16  ;;  %v1132_v56 = vshll.u32 %v3549_v48, 16  ;;  %v3071_v58 = vpop.f32.mrf.mxu0  ;;  %v1078_v59 = vrot.slane %v1077_v52, 2 }
 0x192   :  { %v848_v0 = vpack.c.bf16 %v3071_v58, %v3070_v38  ;;  %v2968_v1 = vpack.c.bf16 %v3071_v58, %v3071_v58  ;;  %v1806_v2 = vrot.slane %v1798_v57, %v3334_v37  ;;  %v1520_v3 = vrot.slane %v1074_v7, 7  ;;  %v3125_v7 = vld [vmem:[%s4422_s2 + $0x20] sm:$0xff]  }
 0x193   :  { %4480 = vst [vmem:[#allocation19_spill] sm:$0xff] %v3562_v54  ;;  %v799_v5 = vpop.f32.mrf.mxu0  ;;  %v1083_v8 = vsel %vm3519_vm11, %v1078_v59, %v1082_v53  ;;  %v1513_v9 = vor.u32 %v1512_v62, %v1050_v47  ;;  %v1515_v10 = vrot.slane %v1512_v62, 2  ;;  %v1517_v29 = vor.u32 %v1516_v63, %v1060_v35 }
 0x194   :  { %v3583_v60 = vrot.slane %v848_v0, %v3334_v37  ;;  %v3586_v36 = vrot.slane %v2968_v1, %v3334_v37  ;;  %v847_v11 = vpack.c.bf16 %v799_v5, %v796_v49  ;;  %v2967_v12 = vpack.c.bf16 %v799_v5, %v799_v5 }
 0x195   :  { %v1799_v47 = vcombine.low %v1073_v51, %v1083_v8  ;;  %v3074_v13 = vpop.f32.mrf.mxu0  ;;  %v1514_v35 = vsel %vm3591_vm1, %v2981_v61, %v1513_v9  ;;  %v1518_v16 = vsel %vm3591_vm1, %v1515_v10, %v1517_v29  ;;  %v1519_v17 = vrot.slane %v1516_v63, 2 }
 0x196   :  { %4483 = vst [vmem:[#allocation20_spill] sm:$0xff] %v3586_v36  ;;  %v3601_v18 = vcombine.high %v3583_v60, %v3583_v60  ;;  %v3605_v33 = vcombine.high %v3586_v36, %v3586_v36  ;;  %v3610_v39 = vrot.slane %v847_v11, %v3334_v37  ;;  %v3613_v40 = vrot.slane %v2967_v12, %v3334_v37 }
 0x197   :  { %v1813_v41 = vrot.slane %v1799_v47, %v3334_v37  ;;  %v812_v42 = vpop.f32.mrf.mxu0  ;;  %v1521_v49 = vor.u32 %v1520_v3, %v1070_v6  ;;  %v1523_v50 = vrot.slane %v1520_v3, 2  ;;  %v1526_v51 = vrot.slane %v1524_v26, 7 }
 0x198   :  { %v2102_v52 = vcombine.low %v1514_v35, %v1518_v16  ;;  %v3622_v53 = vcombine.high %v3546_v46, %v3546_v46  ;;  %v3626_v57 = vcombine.high %v3610_v39, %v3610_v39  ;;  %v2974_v6 = vrot.slane %v3438_v19, 9 }
 0x199   :  { %v1814_v58 = vcombine.low %v1806_v2, %v1813_v41  ;;  %v1522_v59 = vsel %vm3591_vm1, %v1519_v17, %v1521_v49  ;;  %v3075_v30 = vpop.f32.mrf.mxu0  ;;  %v1527_v61 = vor.u32 %v1526_v51, %v1080_v24  ;;  %v1416_v2 = vrot.slane %v1414_v27, 2 }
 0x19a   :  { %v2110_v26 = vrot.slane %v2102_v52, %v3334_v37  ;;  %v850_v62 = vpack.c.bf16 %v3075_v30, %v3074_v13  ;;  %v2970_v63 = vpack.c.bf16 %v3075_v30, %v3075_v30  ;;  %v1415_v1 = vsel %vm3484_vm6, %v2974_v6, %v1414_v27 }
 0x19b   :  { %1934 = vrot.lane.b32.xlu0 %v1814_v58, %s3235_s1  ;;  %v815_v0 = vpop.f32.mrf.mxu0  ;;  %v1417_v3 = vrot.slane %v3442_v20, 7  ;;  %v1420_v14 = vrot.slane %v3546_v46, 7  ;;  %v1528_v24 = vsel %vm3591_vm1, %v1523_v50, %v1527_v61  ;;  %v1423_v50 = vrot.slane %v3622_v53, 7 }
 0x19c   :  { %v3646_v5 = vrot.slane %v850_v62, %v3334_v37  ;;  %v3649_v8 = vrot.slane %v2970_v63, %v3334_v37  ;;  %v849_v9 = vpack.c.bf16 %v815_v0, %v812_v42  ;;  %v2103_v10 = vcombine.low %v1522_v59, %v1528_v24 }
 0x19d   :  { %v2969_v29 = vpack.c.bf16 %v815_v0, %v815_v0  ;;  %v1418_v11 = vsel %vm3484_vm6, %v1416_v2, %v1417_v3  ;;  %v1419_v27 = vrot.slane %v1417_v3, 2  ;;  %v1422_v42 = vrot.slane %v1420_v14, 2 }
 0x19e   :  { %v3655_v12 = vcombine.high %v3649_v8, %v3649_v8  ;;  %v3660_v35 = vrot.slane %v849_v9, %v3334_v37  ;;  %v2117_v16 = vrot.slane %v2103_v10, %v3334_v37  ;;  %v1967_v51 = vcombine.low %v1415_v1, %v1418_v11 }
 0x19f   :  { %v3664_v17 = vrot.slane %v2969_v29, %v3334_v37  ;;  %v1421_v41 = vsel %vm3484_vm6, %v1419_v27, %v1420_v14  ;;  %v1085_v52 = vshrl.u32 %v3438_v19, 16  ;;  %v1088_v30 = vshll.u32 %v3438_v19, 16  ;;  %v3078_v14 = vpop.f32.mrf.mxu0 }
 0x1a0   :  { %v3670_v49 = vcombine.high %v3660_v35, %v3660_v35  ;;  %v2118_v58 = vcombine.low %v2110_v26, %v2117_v16  ;;  %v1094_v6 = vshll.u32 %v3429_v15, 16  ;;  %v1424_v61 = vsel %vm3484_vm6, %v1422_v42, %v1423_v50 }
 0x1a1   :  { %v3676_v59 = vcombine.high %v3664_v17, %v3664_v17  ;;  %v1975_v62 = vrot.slane %v1967_v51, %v3334_v37  ;;  %v1087_v63 = vrot.slane %v1085_v52, 6  ;;  %v1098_v0 = vshrl.u32 %v3429_v15, 16  ;;  %v3709_v13 = vpop.f32.mrf.mxu0 }
 0x1a2   :  { %4486 = vst [vmem:[#allocation21_spill] sm:$0xff] %v3670_v49  ;;  %2238 = vrot.lane.b32.xlu0 %v2118_v58, %s3236_s10  ;;  %v1968_v26 = vcombine.low %v1421_v41, %v1424_v61  ;;  %v1090_v1 = vrot.slane %v1088_v30, 7  ;;  %v1096_v2 = vrot.slane %v1094_v6, 7  ;;  %v1104_v3 = vshll.u32 %v3442_v20, 16 }
 0x1a3   :  { %v1100_v24 = vrot.slane %v1098_v0, 6  ;;  %v1108_v9 = vshrl.u32 %v3442_v20, 16  ;;  %v1114_v10 = vshll.u32 %v3546_v46, 16  ;;  %v1118_v29 = vshrl.u32 %v3546_v46, 16 }
 0x1a4   :  { %v1982_v11 = vrot.slane %v1968_v26, %v3334_v37  ;;  %v1091_v27 = vor.u32 %v1090_v1, %v1087_v63  ;;  %v1106_v16 = vrot.slane %v1104_v3, 7  ;;  %v4431_v41 = vshll.u32 %v3622_v53, 16 }
 0x1a5   :  { %v1101_v42 = vor.u32 %v1100_v24, %v1096_v2  ;;  %v1110_v50 = vrot.slane %v1108_v9, 6  ;;  %v1116_v51 = vrot.slane %v1114_v10, 7  ;;  %v1120_v58 = vrot.slane %v1118_v29, 6 }
 0x1a6   :  { %v1983_v30 = vcombine.low %v1975_v62, %v1982_v11  ;;  %v1092_v61 = vrot.slane %v1091_v27, 2  ;;  %v1126_v63 = vrot.slane %v4431_v41, 7  ;;  %v1131_v26 = vrot.slane %v4430_v55, 6 }
 0x1a7   :  { %v1102_v1 = vrot.slane %v1101_v42, 2  ;;  %v1111_v25 = vor.u32 %v1110_v50, %v1106_v16  ;;  %v1121_v24 = vor.u32 %v1120_v58, %v1116_v51  ;;  %v1134_v47 = vrot.slane %v1132_v56, 7 }
 0x1a8   :  { %2088 = vrot.lane.b32.xlu0 %v1983_v30, %s3231_s4  ;;  %v1097_v62 = vsel %vm3519_vm11, %v1092_v61, %v1096_v2  ;;  %v4433_v11 = vshll.u32 %v3562_v54, 16  ;;  %v4434_v27 = vshrl.u32 %v3562_v54, 16  ;;  %v4432_v38 = vshll.u32 %v3532_v23, 16 }
 0x1a9   :  { %v1107_v42 = vsel %vm3519_vm11, %v1102_v1, %v1106_v16  ;;  %v1112_v50 = vrot.slane %v1111_v25, 2  ;;  %v1122_v58 = vrot.slane %v1121_v24, 2  ;;  %v1135_v34 = vor.u32 %v1134_v47, %v1131_v26  ;;  %v3079_v47 = vpop.f32.mrf.mxu0 }
 0x1aa   :  { %v1815_v55 = vcombine.low %v1097_v62, %v1107_v42  ;;  %v1140_v56 = vrot.slane %v4433_v11, 7  ;;  %v1144_v30 = vrot.slane %v4434_v27, 6  ;;  %v1150_v2 = vrot.slane %v4432_v38, 7 }
 0x1ab   :  { %v1117_v61 = vsel %vm3519_vm11, %v1112_v50, %v1116_v51  ;;  %v1127_v41 = vsel %vm3519_vm11, %v1122_v58, %v1126_v63  ;;  %v1136_v16 = vrot.slane %v1135_v34, 2  ;;  %v1152_v25 = vshrl.u32 %v3532_v23, 16 }
 0x1ac   :  { %v1816_v26 = vcombine.low %v1117_v61, %v1127_v41  ;;  %v1823_v1 = vrot.slane %v1815_v55, %v3334_v37  ;;  %v1145_v24 = vor.u32 %v1144_v30, %v1140_v56  ;;  %v4435_v62 = vshll.u32 %v3539_v44, 16 }
 0x1ad   :  { %v1141_v42 = vsel %vm3519_vm11, %v1136_v16, %v1140_v56  ;;  %v1154_v38 = vrot.slane %v1152_v25, 6  ;;  %v1162_v11 = vshrl.u32 %v3539_v44, 16  ;;  %v1168_v51 = vshll.u32 %v3535_v31, 16 }
 0x1ae   :  { %v1830_v63 = vrot.slane %v1816_v26, %v3334_v37  ;;  %v1146_v34 = vrot.slane %v1145_v24, 2  ;;  %v1160_v50 = vrot.slane %v4435_v62, 7  ;;  %v852_v41 = vpack.c.bf16 %v3079_v47, %v3078_v14 }
 0x1af   :  { %v1155_v58 = vor.u32 %v1154_v38, %v1150_v2  ;;  %v1164_v55 = vrot.slane %v1162_v11, 6  ;;  %v1170_v30 = vrot.slane %v1168_v51, 7  ;;  %v2972_v56 = vpack.c.bf16 %v3079_v47, %v3079_v47 }
 0x1b0   :  { %v1831_v61 = vcombine.low %v1823_v1, %v1830_v63  ;;  %v1151_v16 = vsel %vm3519_vm11, %v1146_v34, %v1150_v2  ;;  %v3748_v27 = vrot.slane %v852_v41, %v3334_v37  ;;  %v2982_v26 = vrot.slane %v1085_v52, 9 }
 0x1b1   :  { %v1156_v24 = vrot.slane %v1155_v58, 2  ;;  %v1165_v14 = vor.u32 %v1164_v55, %v1160_v50  ;;  %v1832_v38 = vcombine.low %v1141_v42, %v1151_v16  ;;  %v3753_v62 = vrot.slane %v2972_v56, %v3334_v37  ;;  %v831_v58 = vpop.f32.mrf.mxu0 }
 0x1b2   :  { %1936 = vrot.lane.b32.xlu1 %v1831_v61, %s3235_s1  ;;  %v3758_v47 = vcombine.high %v3748_v27, %v3748_v27  ;;  %v1531_v2 = vrot.slane %v1098_v0, 7  ;;  %v1535_v1 = vrot.slane %v1108_v9, 7  ;;  %v1539_v52 = vrot.slane %v1118_v29, 7 }
 0x1b3   :  { %v1161_v42 = vsel %vm3519_vm11, %v1156_v24, %v1160_v50  ;;  %v1166_v63 = vrot.slane %v1165_v14, 2  ;;  %v1840_v34 = vrot.slane %v1832_v38, %v3334_v37  ;;  %v1543_v41 = vshrl.u32 %v3622_v53, 16 }
 0x1b4   :  { %v1532_v55 = vor.u32 %v1531_v2, %v1094_v6  ;;  %v1534_v56 = vrot.slane %v1531_v2, 2  ;;  %v1536_v0 = vor.u32 %v1535_v1, %v1104_v3  ;;  %v1538_v9 = vrot.slane %v1535_v1, 2 }
 0x1b5   :  { %v1171_v29 = vsel %vm3519_vm11, %v1166_v63, %v1170_v30  ;;  %v1540_v50 = vor.u32 %v1539_v52, %v1114_v10  ;;  %v1542_v61 = vrot.slane %v1539_v52, 2  ;;  %v1545_v16 = vrot.slane %v1543_v41, 7 }
 0x1b6   :  { %v1833_v24 = vcombine.low %v1161_v42, %v1171_v29  ;;  %v1533_v14 = vsel %vm3591_vm1, %v2982_v26, %v1532_v55  ;;  %v1537_v6 = vsel %vm3591_vm1, %v1534_v56, %v1536_v0  ;;  %v851_v38 = vpack.c.bf16 %v831_v58, %v3709_v13 }
 0x1b7   :  { %v1541_v3 = vsel %vm3591_vm1, %v1538_v9, %v1540_v50  ;;  %v4487_v2 = vshll.u32 %v3622_v53, 16  ;;  %v2119_v1 = vcombine.low %v1533_v14, %v1537_v6  ;;  %v2971_v63 = vpack.c.bf16 %v831_v58, %v831_v58 }
 0x1b8   :  { %v1847_v10 = vrot.slane %v1833_v24, %v3334_v37  ;;  %v3789_v52 = vrot.slane %v851_v38, %v3334_v37  ;;  %v4488_v26 = vshrl.u32 %v3549_v48, 16  ;;  %v4489_v41 = vshrl.u32 %v3562_v54, 16 }
 0x1b9   :  { %v1546_v30 = vor.u32 %v1545_v16, %v4487_v2  ;;  %v2127_v56 = vrot.slane %v2119_v1, %v3334_v37  ;;  %v3799_v0 = vrot.slane %v2971_v63, %v3334_v37  ;;  %v1554_v58 = vrot.slane %v1152_v25, 7 }
 0x1ba   :  { %v2983_v42 = vrot.slane %v4488_v26, 9  ;;  %v1550_v55 = vrot.slane %v4489_v41, 7  ;;  %v1848_v9 = vcombine.low %v1840_v34, %v1847_v10  ;;  %v3803_v50 = vcombine.high %v3789_v52, %v3789_v52 }
 0x1bb   :  { %v1547_v13 = vsel %vm3591_vm1, %v1542_v61, %v1546_v30  ;;  %v4490_v16 = vshll.u32 %v3562_v54, 16  ;;  %v3809_v14 = vcombine.high %v3799_v0, %v3799_v0  ;;  %v4491_v6 = vshll.u32 %v3532_v23, 16 }
 0x1bc   :  { %v2120_v29 = vcombine.low %v1541_v3, %v1547_v13  ;;  %v1553_v61 = vrot.slane %v1550_v55, 2  ;;  %v1557_v2 = vrot.slane %v1554_v58, 2  ;;  %1938 = vrot.lane.b32.xlu0 %v1848_v9, %s3235_s1  ;;  %v1558_v3 = vrot.slane %v1162_v11, 7 }
 0x1bd   :  { %v1551_v24 = vor.u32 %v1550_v55, %v4490_v16  ;;  %v1555_v38 = vor.u32 %v1554_v58, %v4491_v6  ;;  %v1562_v30 = vshrl.u32 %v3535_v31, 16  ;;  %v2975_v63 = vrot.slane %v3549_v48, 9 }
 0x1be   :  { %v2134_v25 = vrot.slane %v2120_v29, %v3334_v37  ;;  %v1427_v10 = vrot.slane %v3562_v54, 7  ;;  %v1430_v26 = vrot.slane %v3532_v23, 7  ;;  %v4492_v55 = vshll.u32 %v3539_v44, 16 }
 0x1bf   :  { %v1552_v34 = vsel %vm3591_vm1, %v2983_v42, %v1551_v24  ;;  %v1556_v1 = vsel %vm3591_vm1, %v1553_v61, %v1555_v38  ;;  %v1561_v58 = vrot.slane %v1558_v3, 2  ;;  %v1564_v42 = vrot.slane %v1562_v30, 7 }
 0x1c0   :  { %v2135_v41 = vcombine.low %v2127_v56, %v2134_v25  ;;  %v1559_v13 = vor.u32 %v1558_v3, %v4492_v55  ;;  %v2136_v9 = vcombine.low %v1552_v34, %v1556_v1  ;;  %v1428_v11 = vsel %vm3484_vm6, %v2975_v63, %v1427_v10 }
 0x1c1   :  { %v1429_v29 = vrot.slane %v1427_v10, 2  ;;  %v1432_v16 = vrot.slane %v1430_v26, 2  ;;  %v1565_v61 = vor.u32 %v1564_v42, %v1168_v51  ;;  %v1433_v56 = vrot.slane %v3539_v44, 7 }
 0x1c2   :  { %2240 = vrot.lane.b32.xlu1 %v2135_v41, %s3236_s10  ;;  %v1560_v24 = vsel %vm3591_vm1, %v1557_v2, %v1559_v13  ;;  %v1436_v6 = vrot.slane %v3535_v31, 7  ;;  %v2144_v38 = vrot.slane %v2136_v9, %v3334_v37  ;;  %v3841_v34 = vcombine.high %v3613_v40, %v3613_v40 }
 0x1c3   :  { %v1431_v25 = vsel %vm3484_vm6, %v1429_v29, %v1430_v26  ;;  %v2976_v3 = vrot.slane %v3543_v45, 9  ;;  %v1566_v2 = vsel %vm3591_vm1, %v1561_v58, %v1565_v61  ;;  %v1434_v51 = vsel %vm3484_vm6, %v1432_v16, %v1433_v56 }
 0x1c4   :  { %v1435_v30 = vrot.slane %v1433_v56, 2  ;;  %v1984_v1 = vcombine.low %v1428_v11, %v1431_v25  ;;  %v2137_v63 = vcombine.low %v1560_v24, %v1566_v2  ;;  %v1440_v10 = vrot.slane %v3610_v39, 7 }
 0x1c5   :  { %v1443_v41 = vrot.slane %v3626_v57, 7  ;;  %v1446_v26 = vrot.slane %v3613_v40, 7  ;;  %v1449_v42 = vrot.slane %v3841_v34, 7  ;;  %v4436_v58 = vshrl.u32 %v3543_v45, 16 }
 0x1c6   :  { %v1437_v55 = vsel %vm3484_vm6, %v1435_v30, %v1436_v6  ;;  %v1992_v13 = vrot.slane %v1984_v1, %v3334_v37  ;;  %v2151_v9 = vrot.slane %v2137_v63, %v3334_v37  ;;  %v1441_v11 = vsel %vm3484_vm6, %v2976_v3, %v1440_v10 }
 0x1c7   :  { %v1985_v29 = vcombine.low %v1434_v51, %v1437_v55  ;;  %v1442_v16 = vrot.slane %v1440_v10, 2  ;;  %v1445_v24 = vrot.slane %v1443_v41, 2  ;;  %v1448_v61 = vrot.slane %v1446_v26, 2 }
 0x1c8   :  { %v1175_v56 = vrot.slane %v4436_v58, 6  ;;  %v1176_v6 = vshll.u32 %v3543_v45, 16  ;;  %v2152_v25 = vcombine.low %v2144_v38, %v2151_v9  ;;  %v4438_v1 = vshll.u32 %v3610_v39, 16 }
 0x1c9   :  { %v1999_v2 = vrot.slane %v1985_v29, %v3334_v37  ;;  %v1444_v30 = vsel %vm3484_vm6, %v1442_v16, %v1443_v41  ;;  %v1447_v51 = vsel %vm3484_vm6, %v1445_v24, %v1446_v26  ;;  %v1450_v3 = vsel %vm3484_vm6, %v1448_v61, %v1449_v42 }
 0x1ca   :  { %v2001_v63 = vcombine.low %v1441_v11, %v1444_v30  ;;  %v1178_v10 = vrot.slane %v1176_v6, 7  ;;  %2242 = vrot.lane.b32.xlu0 %v2152_v25, %s3236_s10  ;;  %v2002_v58 = vcombine.low %v1447_v51, %v1450_v3  ;;  %v1184_v38 = vrot.slane %v4438_v1, 7 }
 0x1cb   :  { %v2000_v55 = vcombine.low %v1992_v13, %v1999_v2  ;;  %v1186_v9 = vshrl.u32 %v3610_v39, 16  ;;  %v4437_v16 = vshll.u32 %v3626_v57, 16  ;;  %v1196_v26 = vshrl.u32 %v3626_v57, 16 }
 0x1cc   :  { %v2009_v41 = vrot.slane %v2001_v63, %v3334_v37  ;;  %v1179_v29 = vor.u32 %v1178_v10, %v1175_v56  ;;  %v2016_v42 = vrot.slane %v2002_v58, %v3334_v37  ;;  %v4439_v13 = vshll.u32 %v3613_v40, 16 }
 0x1cd   :  { %2090 = vrot.lane.b32.xlu1 %v2000_v55, %s3231_s4  ;;  %v1188_v11 = vrot.slane %v1186_v9, 6  ;;  %v1206_v24 = vshrl.u32 %v3613_v40, 16  ;;  %v1194_v6 = vrot.slane %v4437_v16, 7  ;;  %v1198_v25 = vrot.slane %v1196_v26, 6 }
 0x1ce   :  { %v1180_v61 = vrot.slane %v1179_v29, 2  ;;  %v4442_v56 = vshll.u32 %v3841_v34, 16  ;;  %v2017_v2 = vcombine.low %v2009_v41, %v2016_v42  ;;  %v1204_v51 = vrot.slane %v4439_v13, 7 }
 0x1cf   :  { %v1189_v30 = vor.u32 %v1188_v11, %v1184_v38  ;;  %v1208_v3 = vrot.slane %v1206_v24, 6  ;;  %v1199_v63 = vor.u32 %v1198_v25, %v1194_v6  ;;  %v4493_v55 = vshrl.u32 %v3583_v60, 16 }
 0x1d0   :  { %v1185_v58 = vsel %vm3519_vm11, %v1180_v61, %v1184_v38  ;;  %v1214_v10 = vrot.slane %v4442_v56, 7  ;;  %2092 = vrot.lane.b32.xlu0 %v2017_v2, %s3231_s4  ;;  %v4494_v41 = vshll.u32 %v3583_v60, 16  ;;  %v4448_v11 = vshll.u32 %v3601_v18, 16 }
 0x1d1   :  { %v1219_v29 = vrot.slane %v4493_v55, 6  ;;  %v1190_v16 = vrot.slane %v1189_v30, 2  ;;  %v1209_v1 = vor.u32 %v1208_v3, %v1204_v51  ;;  %v1200_v13 = vrot.slane %v1199_v63, 2 }
 0x1d2   :  { %v1222_v42 = vrot.slane %v4494_v41, 7  ;;  %v1230_v44 = vshrl.u32 %v3601_v18, 16  ;;  %v4447_v38 = vshll.u32 %v3586_v36, 16  ;;  %v1240_v61 = vshrl.u32 %v3586_v36, 16 }
 0x1d3   :  { %v1195_v25 = vsel %vm3519_vm11, %v1190_v16, %v1194_v6  ;;  %v1210_v55 = vrot.slane %v1209_v1, 2  ;;  %v1228_v2 = vrot.slane %v4448_v11, 7  ;;  %v1205_v30 = vsel %vm3519_vm11, %v1200_v13, %v1204_v51 }
 0x1d4   :  { %v1223_v56 = vor.u32 %v1222_v42, %v1219_v29  ;;  %v1849_v3 = vcombine.low %v1185_v58, %v1195_v25  ;;  %v1232_v41 = vrot.slane %v1230_v44, 6  ;;  %v1238_v63 = vrot.slane %v4447_v38, 7 }
 0x1d5   :  { %v1215_v31 = vsel %vm3519_vm11, %v1210_v55, %v1214_v10  ;;  %v1242_v54 = vrot.slane %v1240_v61, 6  ;;  %v1246_v16 = vshll.u32 %v3605_v33, 16  ;;  %v1250_v42 = vshrl.u32 %v3605_v33, 16 }
 0x1d6   :  { %v1224_v48 = vrot.slane %v1223_v56, 2  ;;  %v1850_v1 = vcombine.low %v1205_v30, %v1215_v31  ;;  %v1857_v6 = vrot.slane %v1849_v3, %v3334_v37  ;;  %v1233_v29 = vor.u32 %v1232_v41, %v1228_v2 }
 0x1d7   :  { %v1243_v51 = vor.u32 %v1242_v54, %v1238_v63  ;;  %v1248_v58 = vrot.slane %v1246_v16, 7  ;;  %v1256_v25 = vshll.u32 %v3660_v35, 16  ;;  %v1252_v56 = vrot.slane %v1250_v42, 6 }
 0x1d8   :  { %v1229_v13 = vsel %vm3519_vm11, %v1224_v48, %v1228_v2  ;;  %v1864_v38 = vrot.slane %v1850_v1, %v3334_v37  ;;  %v1234_v10 = vrot.slane %v1233_v29, 2  ;;  %v4495_v55 = vshrl.u32 %v3543_v45, 16 }
 0x1d9   :  { %v1244_v31 = vrot.slane %v1243_v51, 2  ;;  %v1258_v30 = vrot.slane %v1256_v25, 7  ;;  %v1569_v3 = vrot.slane %v1186_v9, 7  ;;  %v1573_v41 = vrot.slane %v1196_v26, 7 }
 0x1da   :  { %v2984_v11 = vrot.slane %v4495_v55, 9  ;;  %v1865_v23 = vcombine.low %v1857_v6, %v1864_v38  ;;  %v1239_v19 = vsel %vm3519_vm11, %v1234_v10, %v1238_v63  ;;  %v1253_v48 = vor.u32 %v1252_v56, %v1248_v58 }
 0x1db   :  { %v1577_v54 = vrot.slane %v1206_v24, 7  ;;  %v1249_v2 = vsel %vm3519_vm11, %v1244_v31, %v1248_v58  ;;  %v1866_v15 = vcombine.low %v1229_v13, %v1239_v19  ;;  %v4496_v1 = vshll.u32 %v3610_v39, 16 }
 0x1dc   :  { %v1572_v20 = vrot.slane %v1569_v3, 2  ;;  %1940 = vrot.lane.b32.xlu1 %v1865_v23, %s3235_s1  ;;  %v1254_v51 = vrot.slane %v1253_v48, 2  ;;  %v4497_v9 = vshll.u32 %v3626_v57, 16  ;;  %v1576_v38 = vrot.slane %v1573_v41, 2 }
 0x1dd   :  { %v1570_v29 = vor.u32 %v1569_v3, %v4496_v1  ;;  %v4498_v6 = vshll.u32 %v3613_v40, 16  ;;  %v1874_v24 = vrot.slane %v1866_v15, %v3334_v37  ;;  %v1580_v19 = vrot.slane %v1577_v54, 2 }
 0x1de   :  { %v1574_v26 = vor.u32 %v1573_v41, %v4497_v9  ;;  %v1581_v13 = vshrl.u32 %v3841_v34, 16  ;;  %v1259_v10 = vsel %vm3519_vm11, %v1254_v51, %v1258_v30  ;;  %v4499_v55 = vshrl.u32 %v3583_v60, 16 }
 0x1df   :  { %v1578_v63 = vor.u32 %v1577_v54, %v4498_v6  ;;  %v1571_v58 = vsel %vm3591_vm1, %v2984_v11, %v1570_v29  ;;  %v1867_v3 = vcombine.low %v1249_v2, %v1259_v10  ;;  %v1588_v48 = vrot.slane %v1230_v44, 7 }
 0x1e0   :  { %v1575_v23 = vsel %vm3591_vm1, %v1572_v20, %v1574_v26  ;;  %v2985_v31 = vrot.slane %v4499_v55, 9  ;;  %v1583_v15 = vrot.slane %v1581_v13, 7  ;;  %v1592_v11 = vrot.slane %v1240_v61, 7 }
 0x1e1   :  { %v1579_v56 = vsel %vm3591_vm1, %v1576_v38, %v1578_v63  ;;  %v2153_v41 = vcombine.low %v1571_v58, %v1575_v23  ;;  %v1596_v54 = vrot.slane %v1250_v42, 7  ;;  %v1600_v1 = vshrl.u32 %v3660_v35, 16 }
 0x1e2   :  { %v2977_v29 = vrot.slane %v3583_v60, 9  ;;  %v1881_v30 = vrot.slane %v1867_v3, %v3334_v37  ;;  %v4500_v20 = vshll.u32 %v3841_v34, 16  ;;  %v4501_v26 = vshll.u32 %v3601_v18, 16 }
 0x1e3   :  { %v2161_v9 = vrot.slane %v2153_v41, %v3334_v37  ;;  %v1591_v2 = vrot.slane %v1588_v48, 2  ;;  %v4502_v6 = vshll.u32 %v3586_v36, 16  ;;  %v1595_v61 = vrot.slane %v1592_v11, 2 }
 0x1e4   :  { %v1584_v51 = vor.u32 %v1583_v15, %v4500_v20  ;;  %v1589_v38 = vor.u32 %v1588_v48, %v4501_v26  ;;  %v1597_v42 = vor.u32 %v1596_v54, %v1246_v16  ;;  %v1882_v63 = vcombine.low %v1874_v24, %v1881_v30 }
 0x1e5   :  { %v1593_v44 = vor.u32 %v1592_v11, %v4502_v6  ;;  %v1599_v10 = vrot.slane %v1596_v54, 2  ;;  %v1602_v15 = vrot.slane %v1600_v1, 7  ;;  %v1453_v16 = vrot.slane %v3601_v18, 7 }
 0x1e6   :  { %v1585_v58 = vsel %vm3591_vm1, %v1580_v19, %v1584_v51  ;;  %v1590_v13 = vsel %vm3591_vm1, %v2985_v31, %v1589_v38  ;;  %v1598_v3 = vsel %vm3591_vm1, %v1595_v61, %v1597_v42  ;;  %1942 = vrot.lane.b32.xlu0 %v1882_v63, %s3235_s1  ;;  %v1456_v24 = vrot.slane %v3586_v36, 7 }
 0x1e7   :  { %v2154_v23 = vcombine.low %v1579_v56, %v1585_v58  ;;  %v1594_v55 = vsel %vm3591_vm1, %v1591_v2, %v1593_v44  ;;  %v1459_v19 = vrot.slane %v3605_v33, 7  ;;  %v1603_v48 = vor.u32 %v1602_v15, %v1256_v25 }
 0x1e8   :  { %v2170_v41 = vcombine.low %v1590_v13, %v1594_v55  ;;  %v1462_v56 = vrot.slane %v3660_v35, 7  ;;  %v3967_v11 = vcombine.high %v3646_v5, %v3646_v5  ;;  %v1454_v1 = vsel %vm3484_vm6, %v2977_v29, %v1453_v16 }
 0x1e9   :  { %v2168_v31 = vrot.slane %v2154_v23, %v3334_v37  ;;  %v1455_v30 = vrot.slane %v1453_v16, 2  ;;  %v1458_v20 = vrot.slane %v1456_v24, 2  ;;  %v1604_v26 = vsel %vm3591_vm1, %v1599_v10, %v1603_v48 }
 0x1ea   :  { %v2178_v54 = vrot.slane %v2170_v41, %v3334_v37  ;;  %v1461_v38 = vrot.slane %v1459_v19, 2  ;;  %v2978_v25 = vrot.slane %v3670_v49, 9  ;;  %v2171_v2 = vcombine.low %v1598_v3, %v1604_v26 }
 0x1eb   :  { %v2169_v51 = vcombine.low %v2161_v9, %v2168_v31  ;;  %v1457_v6 = vsel %vm3484_vm6, %v1455_v30, %v1456_v24  ;;  %v1460_v44 = vsel %vm3484_vm6, %v1458_v20, %v1459_v19  ;;  %v1466_v61 = vrot.slane %v3664_v17, 7 }
 0x1ec   :  { %v1463_v29 = vsel %vm3484_vm6, %v1461_v38, %v1462_v56  ;;  %v2018_v9 = vcombine.low %v1454_v1, %v1457_v6  ;;  %v1469_v42 = vrot.slane %v3676_v59, 7  ;;  %v1472_v63 = vrot.slane %v3646_v5, 7 }
 0x1ed   :  { %2244 = vrot.lane.b32.xlu1 %v2169_v51, %s3236_s10  ;;  %v2185_v58 = vrot.slane %v2171_v2, %v3334_v37  ;;  %v2019_v13 = vcombine.low %v1460_v44, %v1463_v29  ;;  %v1467_v10 = vsel %vm3484_vm6, %v2978_v25, %v1466_v61  ;;  %v1468_v23 = vrot.slane %v1466_v61, 2 }
 0x1ee   :  { %v2026_v55 = vrot.slane %v2018_v9, %v3334_v37  ;;  %v1471_v3 = vrot.slane %v1469_v42, 2  ;;  %v1474_v15 = vrot.slane %v1472_v63, 2  ;;  %v1475_v41 = vrot.slane %v3967_v11, 7 }
 0x1ef   :  { %v2186_v16 = vcombine.low %v2178_v54, %v2185_v58  ;;  %v2033_v24 = vrot.slane %v2019_v13, %v3334_v37  ;;  %v1470_v19 = vsel %vm3484_vm6, %v1468_v23, %v1469_v42  ;;  %v1261_v31 = vshrl.u32 %v3670_v49, 16 }
 0x1f0   :  { %v1473_v48 = vsel %vm3484_vm6, %v1471_v3, %v1472_v63  ;;  %v1476_v56 = vsel %vm3484_vm6, %v1474_v15, %v1475_v41  ;;  %v2035_v1 = vcombine.low %v1467_v10, %v1470_v19  ;;  %v1264_v30 = vshll.u32 %v3670_v49, 16 }
 0x1f1   :  { %2246 = vrot.lane.b32.xlu0 %v2186_v16, %s3236_s10  ;;  %v2034_v20 = vcombine.low %v2026_v55, %v2033_v24  ;;  %v2036_v54 = vcombine.low %v1473_v48, %v1476_v56  ;;  %v1263_v51 = vrot.slane %v1261_v31, 6  ;;  %v1270_v26 = vshll.u32 %v3664_v17, 16 }
 0x1f2   :  { %v2043_v38 = vrot.slane %v2035_v1, %v3334_v37  ;;  %v1266_v25 = vrot.slane %v1264_v30, 7  ;;  %v1274_v2 = vshrl.u32 %v3664_v17, 16  ;;  %v4459_v6 = vshll.u32 %v3676_v59, 16 }
 0x1f3   :  { %2094 = vrot.lane.b32.xlu1 %v2034_v20, %s3231_s4  ;;  %v2050_v44 = vrot.slane %v2036_v54, %v3334_v37  ;;  %v1272_v61 = vrot.slane %v1270_v26, 7  ;;  %v1284_v29 = vshrl.u32 %v3676_v59, 16  ;;  %v4457_v9 = vshll.u32 %v3646_v5, 16 }
 0x1f4   :  { %v1267_v42 = vor.u32 %v1266_v25, %v1263_v51  ;;  %v1276_v63 = vrot.slane %v1274_v2, 6  ;;  %v1282_v58 = vrot.slane %v4459_v6, 7  ;;  %v4458_v13 = vshrl.u32 %v3646_v5, 16 }
 0x1f5   :  { %v2051_v10 = vcombine.low %v2043_v38, %v2050_v44  ;;  %v1286_v23 = vrot.slane %v1284_v29, 6  ;;  %v1292_v55 = vrot.slane %v4457_v9, 7  ;;  %v4456_v3 = vshll.u32 %v3967_v11, 16 }
 0x1f6   :  { %v1268_v15 = vrot.slane %v1267_v42, 2  ;;  %v1277_v41 = vor.u32 %v1276_v63, %v1272_v61  ;;  %v1296_v16 = vrot.slane %v4458_v13, 6  ;;  %v4503_v24 = vshrl.u32 %v3649_v8, 16 }
 0x1f7   :  { %2096 = vrot.lane.b32.xlu0 %v2051_v10, %s3231_s4  ;;  %v1287_v48 = vor.u32 %v1286_v23, %v1282_v58  ;;  %v1302_v56 = vrot.slane %v4456_v3, 7  ;;  %v4504_v1 = vshll.u32 %v3649_v8, 16  ;;  %v1314_v20 = vshll.u32 %v3655_v12, 16 }
 0x1f8   :  { %v1307_v19 = vrot.slane %v4503_v24, 6  ;;  %v1273_v54 = vsel %vm3519_vm11, %v1268_v15, %v1272_v61  ;;  %v1278_v51 = vrot.slane %v1277_v41, 2  ;;  %v1297_v38 = vor.u32 %v1296_v16, %v1292_v55 }
 0x1f9   :  { %v1310_v30 = vrot.slane %v4504_v1, 7  ;;  %v1318_v25 = vshrl.u32 %v3655_v12, 16  ;;  %v1288_v44 = vrot.slane %v1287_v48, 2  ;;  %v1316_v63 = vrot.slane %v1314_v20, 7 }
 0x1fa   :  { %v1324_v10 = vshll.u32 %v3789_v52, 16  ;;  %v1283_v23 = vsel %vm3519_vm11, %v1278_v51, %v1282_v58  ;;  %v1298_v24 = vrot.slane %v1297_v38, 2  ;;  %v1328_v1 = vshrl.u32 %v3789_v52, 16 }
 0x1fb   :  { %v1311_v42 = vor.u32 %v1310_v30, %v1307_v19  ;;  %v1320_v3 = vrot.slane %v1318_v25, 6  ;;  %v1293_v9 = vsel %vm3519_vm11, %v1288_v44, %v1292_v55  ;;  %v1883_v61 = vcombine.low %v1273_v54, %v1283_v23 }
 0x1fc   :  { %v1326_v41 = vrot.slane %v1324_v10, 7  ;;  %v1303_v16 = vsel %vm3519_vm11, %v1298_v24, %v1302_v56  ;;  %v1330_v48 = vrot.slane %v1328_v1, 6  ;;  %v1334_v30 = vshll.u32 %v3803_v50, 16 }
 0x1fd   :  { %v1312_v15 = vrot.slane %v1311_v42, 2  ;;  %v1321_v19 = vor.u32 %v1320_v3, %v1316_v63  ;;  %v1884_v13 = vcombine.low %v1293_v9, %v1303_v16  ;;  %v1891_v58 = vrot.slane %v1883_v61, %v3334_v37 }
 0x1fe   :  { %v1338_v38 = vshrl.u32 %v3803_v50, 16  ;;  %v1331_v55 = vor.u32 %v1330_v48, %v1326_v41  ;;  %v1336_v54 = vrot.slane %v1334_v30, 7  ;;  %v1344_v44 = vshll.u32 %v3799_v0, 16 }
 0x1ff   :  { %v1317_v51 = vsel %vm3519_vm11, %v1312_v15, %v1316_v63  ;;  %v1322_v6 = vrot.slane %v1321_v19, 2  ;;  %v1898_v42 = vrot.slane %v1884_v13, %v3334_v37  ;;  %v2986_v3 = vrot.slane %v1261_v31, 9 }
 0x200   :  { %v1340_v56 = vrot.slane %v1338_v38, 6  ;;  %v1607_v23 = vrot.slane %v1274_v2, 7  ;;  %v1332_v24 = vrot.slane %v1331_v55, 2  ;;  %v1346_v61 = vrot.slane %v1344_v44, 7 }
 0x201   :  { %v1327_v9 = vsel %vm3519_vm11, %v1322_v6, %v1326_v41  ;;  %v1611_v63 = vrot.slane %v1284_v29, 7  ;;  %v1899_v15 = vcombine.low %v1891_v58, %v1898_v42  ;;  %v4505_v49 = vshll.u32 %v3676_v59, 16 }
 0x202   :  { %v1341_v16 = vor.u32 %v1340_v56, %v1336_v54  ;;  %v1900_v19 = vcombine.low %v1317_v51, %v1327_v9  ;;  %v1608_v48 = vor.u32 %v1607_v23, %v1270_v26  ;;  %v1337_v13 = vsel %vm3519_vm11, %v1332_v24, %v1336_v54 }
 0x203   :  { %v1610_v36 = vrot.slane %v1607_v23, 2  ;;  %v1612_v31 = vor.u32 %v1611_v63, %v4505_v49  ;;  %v1614_v2 = vrot.slane %v1611_v63, 2  ;;  %1944 = vrot.lane.b32.xlu1 %v1899_v15, %s3235_s1  ;;  %v4506_v58 = vshrl.u32 %v3646_v5, 16 }
 0x204   :  { %v1342_v6 = vrot.slane %v1341_v16, 2  ;;  %v1908_v41 = vrot.slane %v1900_v19, %v3334_v37  ;;  %v1609_v29 = vsel %vm3591_vm1, %v2986_v3, %v1608_v48  ;;  %v1619_v55 = vshrl.u32 %v3967_v11, 16 }
 0x205   :  { %v1615_v51 = vrot.slane %v4506_v58, 7  ;;  %v1613_v26 = vsel %vm3591_vm1, %v1610_v36, %v1612_v31  ;;  %v4507_v54 = vshrl.u32 %v3649_v8, 16  ;;  %v1626_v42 = vrot.slane %v1318_v25, 7 }
 0x206   :  { %v1347_v56 = vsel %vm3519_vm11, %v1342_v6, %v1346_v61  ;;  %v4508_v23 = vshll.u32 %v3646_v5, 16  ;;  %v2187_v3 = vcombine.low %v1609_v29, %v1613_v26  ;;  %v1621_v15 = vrot.slane %v1619_v55, 7 }
 0x207   :  { %v2987_v49 = vrot.slane %v4507_v54, 9  ;;  %v1618_v24 = vrot.slane %v1615_v51, 2  ;;  %v1901_v63 = vcombine.low %v1337_v13, %v1347_v56  ;;  %v1627_v16 = vor.u32 %v1626_v42, %v1314_v20 }
 0x208   :  { %v1616_v9 = vor.u32 %v1615_v51, %v4508_v23  ;;  %v1629_v19 = vrot.slane %v1626_v42, 2  ;;  %v2195_v48 = vrot.slane %v2187_v3, %v3334_v37  ;;  %v1630_v31 = vrot.slane %v1328_v1, 7 }
 0x209   :  { %v1634_v58 = vrot.slane %v1338_v38, 7  ;;  %v1915_v25 = vrot.slane %v1901_v63, %v3334_v37  ;;  %v4509_v61 = vshll.u32 %v3967_v11, 16  ;;  %v1628_v51 = vsel %vm3591_vm1, %v2987_v49, %v1627_v16 }
 0x20a   :  { %v1617_v36 = vsel %vm3591_vm1, %v1614_v2, %v1616_v9  ;;  %v1638_v13 = vshrl.u32 %v3799_v0, 16  ;;  %v1631_v29 = vor.u32 %v1630_v31, %v1324_v10  ;;  %v1633_v20 = vrot.slane %v1630_v31, 2 }
 0x20b   :  { %v1622_v6 = vor.u32 %v1621_v15, %v4509_v61  ;;  %v1635_v26 = vor.u32 %v1634_v58, %v1334_v30  ;;  %v1637_v55 = vrot.slane %v1634_v58, 2  ;;  %v1916_v54 = vcombine.low %v1908_v41, %v1915_v25 }
 0x20c   :  { %v1640_v1 = vrot.slane %v1638_v13, 7  ;;  %v2979_v38 = vrot.slane %v3649_v8, 9  ;;  %v1632_v56 = vsel %vm3591_vm1, %v1629_v19, %v1631_v29  ;;  %v1479_v23 = vrot.slane %v3655_v12, 7 }
 0x20d   :  { %v1623_v2 = vsel %vm3591_vm1, %v1618_v24, %v1622_v6  ;;  %v1636_v49 = vsel %vm3591_vm1, %v1633_v20, %v1635_v26  ;;  %1946 = vrot.lane.b32.xlu0 %v1916_v54, %s3235_s1  ;;  %v2204_v30 = vcombine.low %v1628_v51, %v1632_v56  ;;  %v1482_v41 = vrot.slane %v3789_v52, 7 }
 0x20e   :  { %v2188_v42 = vcombine.low %v1617_v36, %v1623_v2  ;;  %v1641_v10 = vor.u32 %v1640_v1, %v1344_v44  ;;  %v1485_v9 = vrot.slane %v3803_v50, 7  ;;  %v1480_v3 = vsel %vm3484_vm6, %v2979_v38, %v1479_v23 }
 0x20f   :  { %v1481_v63 = vrot.slane %v1479_v23, 2  ;;  %v1488_v15 = vrot.slane %v3799_v0, 7  ;;  %v2212_v19 = vrot.slane %v2204_v30, %v3334_v37  ;;  %v1484_v36 = vrot.slane %v1482_v41, 2 }
 0x210   :  { %v2202_v24 = vrot.slane %v2188_v42, %v3334_v37  ;;  %v1642_v16 = vsel %vm3591_vm1, %v1637_v55, %v1641_v10  ;;  %v1487_v44 = vrot.slane %v1485_v9, 2  ;;  %v4102_v61 = vcombine.high %v3753_v62, %v3753_v62 }
 0x211   :  { %v2205_v58 = vcombine.low %v1636_v49, %v1642_v16  ;;  %v1483_v25 = vsel %vm3484_vm6, %v1481_v63, %v1482_v41  ;;  %v1486_v6 = vsel %vm3484_vm6, %v1484_v36, %v1485_v9  ;;  %v2980_v29 = vrot.slane %v3809_v14, 9 }
 0x212   :  { %v2203_v31 = vcombine.low %v2195_v48, %v2202_v24  ;;  %v1489_v51 = vsel %vm3484_vm6, %v1487_v44, %v1488_v15  ;;  %v2052_v13 = vcombine.low %v1480_v3, %v1483_v25  ;;  %v1492_v26 = vrot.slane %v3748_v27, 7 }
 0x213   :  { %v2219_v48 = vrot.slane %v2205_v58, %v3334_v37  ;;  %v2053_v20 = vcombine.low %v1486_v6, %v1489_v51  ;;  %v1495_v55 = vrot.slane %v3758_v47, 7  ;;  %v1498_v2 = vrot.slane %v3753_v62, 7 }
 0x214   :  { %2248 = vrot.lane.b32.xlu1 %v2203_v31, %s3236_s10  ;;  %v2060_v54 = vrot.slane %v2052_v13, %v3334_v37  ;;  %v1501_v1 = vrot.slane %v4102_v61, 7  ;;  %v1349_v38 = vshrl.u32 %v3809_v14, 16  ;;  %v1493_v49 = vsel %vm3484_vm6, %v2980_v29, %v1492_v26 }
 0x215   :  { %v2220_v42 = vcombine.low %v2212_v19, %v2219_v48  ;;  %v2067_v56 = vrot.slane %v2053_v20, %v3334_v37  ;;  %v1494_v23 = vrot.slane %v1492_v26, 2  ;;  %v1497_v10 = vrot.slane %v1495_v55, 2 }
 0x216   :  { %v1500_v30 = vrot.slane %v1498_v2, 2  ;;  %v1351_v41 = vrot.slane %v1349_v38, 6  ;;  %v1352_v9 = vshll.u32 %v3809_v14, 16  ;;  %v1358_v63 = vshll.u32 %v3748_v27, 16 }
 0x217   :  { %2250 = vrot.lane.b32.xlu0 %v2220_v42, %s3236_s10  ;;  %v2068_v24 = vcombine.low %v2060_v54, %v2067_v56  ;;  %v1496_v3 = vsel %vm3484_vm6, %v1494_v23, %v1495_v55  ;;  %v1362_v15 = vshrl.u32 %v3748_v27, 16  ;;  %v1499_v16 = vsel %vm3484_vm6, %v1497_v10, %v1498_v2 }
 0x218   :  { %v1502_v19 = vsel %vm3484_vm6, %v1500_v30, %v1501_v1  ;;  %v2069_v36 = vcombine.low %v1493_v49, %v1496_v3  ;;  %v1354_v44 = vrot.slane %v1352_v9, 7  ;;  %v1360_v58 = vrot.slane %v1358_v63, 7 }
 0x219   :  { %2098 = vrot.lane.b32.xlu1 %v2068_v24, %s3231_s4  ;;  %v2070_v31 = vcombine.low %v1499_v16, %v1502_v19  ;;  %v1364_v25 = vrot.slane %v1362_v15, 6  ;;  %v1368_v6 = vshll.u32 %v3758_v47, 16  ;;  %v1372_v29 = vshrl.u32 %v3758_v47, 16 }
 0x21a   :  { %v2077_v51 = vrot.slane %v2069_v36, %v3334_v37  ;;  %v1355_v13 = vor.u32 %v1354_v44, %v1351_v41  ;;  %v1378_v48 = vshll.u32 %v3753_v62, 16  ;;  %v1382_v55 = vshrl.u32 %v3753_v62, 16 }
 0x21b   :  { %v2084_v20 = vrot.slane %v2070_v31, %v3334_v37  ;;  %v1365_v43 = vor.u32 %v1364_v25, %v1360_v58  ;;  %v1370_v26 = vrot.slane %v1368_v6, 7  ;;  %v1374_v2 = vrot.slane %v1372_v29, 6 }
 0x21c   :  { %v1356_v54 = vrot.slane %v1355_v13, 2  ;;  %v1380_v1 = vrot.slane %v1378_v48, 7  ;;  %v1388_v42 = vshll.u32 %v4102_v61, 16  ;;  %v1384_v23 = vrot.slane %v1382_v55, 6 }
 0x21d   :  { %v2085_v56 = vcombine.low %v2077_v51, %v2084_v20  ;;  %v1366_v49 = vrot.slane %v1365_v43, 2  ;;  %v2988_v10 = vrot.slane %v1349_v38, 9  ;;  %v1375_v41 = vor.u32 %v1374_v2, %v1370_v26 }
 0x21e   :  { %v1361_v30 = vsel %vm3519_vm11, %v1356_v54, %v1360_v58  ;;  %v1390_v9 = vrot.slane %v1388_v42, 7  ;;  %v1645_v24 = vrot.slane %v1362_v15, 7  ;;  %v1385_v16 = vor.u32 %v1384_v23, %v1380_v1  ;;  %v3122_v15 = vld [vmem:[%s4422_s2 + $0x38] sm:$0xff]  }
 0x21f   :  { %2100 = vrot.lane.b32.xlu0 %v2085_v56, %s3231_s4  ;;  %v1371_v3 = vsel %vm3519_vm11, %v1366_v49, %v1370_v26  ;;  %v1649_v19 = vrot.slane %v1372_v29, 7  ;;  %v1653_v36 = vrot.slane %v1382_v55, 7  ;;  %v1376_v44 = vrot.slane %v1375_v41, 2  ;;  %v3123_v49 = vld [vmem:[%s4422_s2 + $0x30] sm:$0xff]  }
 0x220   :  { %v1917_v31 = vcombine.low %v1361_v30, %v1371_v3  ;;  %v1646_v25 = vor.u32 %v1645_v24, %v1358_v63  ;;  %v1648_v51 = vrot.slane %v1645_v24, 2  ;;  %v1386_v13 = vrot.slane %v1385_v16, 2  ;;  %v3124_v3 = vld [vmem:[%s4422_s2 + $0x28] sm:$0xff]  }
 0x221   :  { %v1650_v38 = vor.u32 %v1649_v19, %v1368_v6  ;;  %v1381_v58 = vsel %vm3519_vm11, %v1376_v44, %v1380_v1  ;;  %v1652_v20 = vrot.slane %v1649_v19, 2  ;;  %v1654_v43 = vor.u32 %v1653_v36, %v1378_v48  ;;  %v3126_v19 = vld [vmem:[%s4422_s2 + $0x18] sm:$0xff]  }
 0x222   :  { %v1391_v26 = vsel %vm3519_vm11, %v1386_v13, %v1390_v9  ;;  %v1647_v29 = vsel %vm3591_vm1, %v2988_v10, %v1646_v25  ;;  %v1657_v6 = vshrl.u32 %v4102_v61, 16  ;;  %v1925_v54 = vrot.slane %v1917_v31, %v3334_v37  ;;  %v3127_v31 = vld [vmem:[%s4422_s2 + $0x10] sm:$0xff]  }
 0x223   :  { %v1651_v63 = vsel %vm3591_vm1, %v1648_v51, %v1650_v38  ;;  %v1918_v55 = vcombine.low %v1381_v58, %v1391_v26  ;;  %v1656_v2 = vrot.slane %v1653_v36, 2  ;;  %v3237_v1 = vmov 0  }
 0x224   :  { %v1659_v48 = vrot.slane %v1657_v6, 7  ;;  %2568 = vmatprep.subr.bf16.mxu1 %v3237_v1  ;;  %v2221_v4 = vcombine.low %v1647_v29, %v1651_v63  ;;  %v1655_v23 = vsel %vm3591_vm1, %v1652_v20, %v1654_v43  ;;  %v1764_v36 = vcombine.low %v3649_v8, %v3655_v12 }
 0x225   :  { %v1932_v56 = vrot.slane %v1918_v55, %v3334_v37  ;;  %2569 = vmatpush1.bf16.msra.mxu1 %v3122_v15  ;;  %v1765_v44 = vcombine.low %v3789_v52, %v3803_v50  ;;  %v1781_v13 = vcombine.low %v3809_v14, %v3748_v27  ;;  %v1782_v8 = vcombine.low %v3758_v47, %v3753_v62  ;;  %v3128_v14 = vld [vmem:[%s4422_s2 + $0x8] sm:$0xff]  }
 0x226   :  { %v1660_v10 = vor.u32 %v1659_v48, %v1388_v42  ;;  %2570 = vmatprep.subr.bf16.mxu1 %v3237_v1  ;;  %v2229_v24 = vrot.slane %v2221_v4, %v3334_v37  ;;  %v4190_v25 = vrot.slane %v1764_v36, %v3334_v37  ;;  %v2356_v38 = vcombine.low %v3655_v12, %v3789_v52 }
 0x227   :  { %v1933_v30 = vcombine.low %v1925_v54, %v1932_v56  ;;  %v4193_v51 = vrot.slane %v1765_v44, %v3334_v37  ;;  %v2357_v20 = vcombine.low %v3803_v50, %v3799_v0  ;;  %v4207_v43 = vrot.slane %v1781_v13, %v3334_v37  ;;  %v2087_v56 = vpop.permute.xlu1 %2086  ;;  %v4513_v44 = vld [vmem:[#allocation15_spill] sm:$0xff] }
 0x228   :  { %v1661_v41 = vsel %vm3591_vm1, %v1656_v2, %v1660_v10  ;;  %v4210_v15 = vrot.slane %v1782_v8, %v3334_v37  ;;  %v4216_v26 = vrot.slane %v2356_v38, %v3334_v37  ;;  %v2373_v52 = vcombine.low %v3748_v27, %v3758_v47  ;;  %v3130_v47 = vld [vmem:[%s4422_s2 + $0x48] sm:$0xff]   ;;  %v4510_v2 = vld [vmem:[#allocation14_spill] sm:$0xff] }
 0x229   :  { %1948 = vrot.lane.b32.xlu1 %v1933_v30, %s3235_s1  ;;  %v2222_v9 = vcombine.low %v1655_v23, %v1661_v41  ;;  %2571 = vmatpush1.bf16.msra.mxu1 %v3123_v49  ;;  %v1780_v58 = vcombine.low %v4190_v25, %v4193_v51  ;;  %v4219_v12 = vrot.slane %v2357_v20, %v3334_v37  ;;  %v3131_v49 = vld [vmem:[%s4422_s2 + $0x40] sm:$0xff]   ;;  %v4512_v30 = vld [vmem:[#allocation13_spill] sm:$0xff]  ;;  %v4515_v38 = vld [vmem:[#allocation18_spill] sm:$0xff]  ;;  %vm2814_vm6 = vcmask 1047559  }
 0x22a   :  { %2572 = vmatprep.subr.bf16.mxu1 %v3237_v1  ;;  %v2374_v0 = vcombine.low %v3753_v62, %v4102_v61  ;;  %v1662_v50 = vcombine.low %v3445_v21, %v3456_v28  ;;  %v1797_v29 = vcombine.low %v4207_v43, %v4210_v15  ;;  %v1663_v63 = vcombine.low %v3448_v22, %v3462_v32  ;;  %v3129_v21 = vld [vmem:[%s4422_s2] sm:$0xff]   ;;  %v1935_v62 = vpop.permute.xlu0 %1934  ;;  %v3135_v43 = vld [vmem:[#allocation7 + $0x20] sm:$0xff]   ;;  %v3136_v15 = vld [vmem:[#allocation7 + $0x18] sm:$0xff]  }
 0x22b   :  { %v2236_v42 = vrot.slane %v2222_v9, %v3334_v37  ;;  %v2372_v6 = vcombine.low %v4216_v26, %v4219_v12  ;;  %v4235_v55 = vrot.slane %v2373_v52, %v3334_v37  ;;  %v2272_v54 = vcombine.low %v3546_v46, %v3622_v53  ;;  %v4511_v23 = vld [vmem:[#allocation12_spill] sm:$0xff]  ;;  %v4517_v52 = vld [vmem:[#allocation17_spill] sm:$0xff] }
 0x22c   :  { %v4238_v27 = vrot.slane %v2374_v0, %v3334_v37  ;;  %v1670_v22 = vrot.slane %v1662_v50, %v3334_v37  ;;  %v1677_v32 = vrot.slane %v1663_v63, %v3334_v37  ;;  %v1680_v48 = vcombine.low %v4510_v2, %v3546_v46 }
 0x22d   :  { %v2237_v16 = vcombine.low %v2229_v24, %v2236_v42  ;;  %2573 = vmatpush1.bf16.msra.mxu1 %v3124_v3  ;;  %v2271_v10 = vcombine.low %v4511_v23, %v4510_v2  ;;  %v1679_v41 = vcombine.low %v4512_v30, %v4511_v23  ;;  %v2286_v46 = vrot.slane %v2272_v54, %v3334_v37  ;;  %v1937_v3 = vpop.permute.xlu1 %1936 }
 0x22e   :  { %2574 = vmatprep.subr.bf16.mxu1 %v3237_v1  ;;  %v2389_v28 = vcombine.low %v4235_v55, %v4238_v27  ;;  %v1678_v61 = vcombine.low %v1670_v22, %v1677_v32  ;;  %v2239_v53 = vpop.permute.xlu0 %2238  ;;  %v1694_v9 = vrot.slane %v1680_v48, %v3334_v37  ;;  %v1697_v63 = vcombine.low %v4513_v44, %v4517_v52  ;;  %v3133_v55 = vld [vmem:[#allocation7 + $0x30] sm:$0xff]   ;;  %v3134_v27 = vld [vmem:[#allocation7 + $0x28] sm:$0xff]  }
 0x22f   :  { %2252 = vrot.lane.b32.xlu1 %v2237_v16, %s3236_s10  ;;  %v2279_v16 = vrot.slane %v2271_v10, %v3334_v37  ;;  %v2305_v48 = vcombine.low %v3610_v39, %v3626_v57  ;;  %v1714_v23 = vcombine.low %v3626_v57, %v3613_v40  ;;  %v1713_v30 = vcombine.low %v3543_v45, %v3610_v39 }
 0x230   :  { %v2393_v4 = vsel %vm2390_vm13, %v1678_v61, %v1935_v62  ;;  %v1711_v54 = vrot.slane %v1697_v63, %v3334_v37  ;;  %v2323_v57 = vcombine.low %v3605_v33, %v3660_v35  ;;  %v1730_v39 = vcombine.low %v3583_v60, %v3601_v18 }
 0x231   :  { %2575 = vmatpush1.bf16.msra.mxu1 %v3125_v7  ;;  %v2417_v24 = vsel %vm2415_vm2, %v2393_v4, %v2087_v56  ;;  %v1687_v7 = vrot.slane %v1679_v41, %v3334_v37  ;;  %v2306_v56 = vcombine.low %v3613_v40, %v3841_v34  ;;  %v2313_v41 = vrot.slane %v2305_v48, %v3334_v37 }
 0x232   :  { %2576 = vmatprep.subr.bf16.mxu1 %v3237_v1  ;;  %v2434_v42 = vsel %vm2432_vm3, %v2417_v24, %v2239_v53  ;;  %v2089_v13 = vpop.permute.xlu0 %2088  ;;  %v1738_v35 = vrot.slane %v1730_v39, %v3334_v37 }
 0x233   :  { %v1695_v36 = vcombine.low %v1687_v7, %v1694_v9  ;;  %v2320_v53 = vrot.slane %v2306_v56, %v3334_v37  ;;  %v1728_v9 = vrot.slane %v1714_v23, %v3334_v37 }
 0x234   :  { %v2241_v50 = vpop.permute.xlu1 %2240 }
 0x235   :  { %2577 = vmatpush1.bf16.msra.mxu1 %v3126_v19  ;;  %v2287_v19 = vcombine.low %v2279_v16, %v2286_v46  ;;  %v2396_v8 = vsel %vm2390_vm13, %v1695_v36, %v1937_v3  ;;  %v1721_v3 = vrot.slane %v1713_v30, %v3334_v37  ;;  %v2321_v40 = vcombine.low %v2313_v41, %v2320_v53  ;;  %v4518_v16 = vld [vmem:[#allocation20_spill] sm:$0xff] }
 0x236   :  { %2578 = vmatprep.subr.bf16.mxu1 %v3237_v1  ;;  %v2419_v22 = vsel %vm2415_vm2, %v2396_v8, %v2089_v13  ;;  %v1939_v61 = vpop.permute.xlu0 %1938  ;;  %v1731_v7 = vcombine.low %v4518_v16, %v3605_v33 }
 0x237   :  { %v2437_v62 = vsel %vm2432_vm3, %v2419_v22, %v2241_v50  ;;  %v1729_v45 = vcombine.low %v1721_v3, %v1728_v9  ;;  %v4520_v9 = vmov 0.0  }
 0x238   :  { %v1745_v13 = vrot.slane %v1731_v7, %v3334_v37  ;;  %v4374_v7 = vld [vmem:[#allocation5] sm:$0xff] }
 0x239   :  { %2579 = vmatpush1.bf16.msra.mxu1 %v3127_v31 }
 0x23a   :  { %2580 = vmatprep.subr.bf16.mxu1 %v3237_v1 }
 0x23c   :  { %v2243_v46 = vpop.permute.xlu0 %2242 }
 0x23d   :  { %2581 = vmatpush1.bf16.msra.mxu1 %v3128_v14  ;;  %v4516_v14 = vld [vmem:[#allocation16_spill] sm:$0xff] }
 0x23e   :  { %2582 = vmatprep.subr.bf16.mxu1 %v3237_v1  ;;  %v2289_v0 = vcombine.low %v4517_v52, %v4516_v14  ;;  %v1746_v14 = vcombine.low %v1738_v35, %v1745_v13  ;;  %v2340_v52 = vcombine.low %v3646_v5, %v3967_v11  ;;  %v1748_v11 = vcombine.low %v3676_v59, %v3646_v5 }
 0x23f   :  { %v2091_v4 = vpop.permute.xlu1 %2090 }
 0x240   :  { %v2354_v22 = vrot.slane %v2340_v52, %v3334_v37  ;;  %v1762_v48 = vrot.slane %v1748_v11, %v3334_v37 }
 0x241   :  { %2583 = vmatpush1.bf16.msra.mxu1 %v3129_v21 }
 0x242   :  { %2596 = vmatprep.subr.bf16.mxu1 %v3237_v1  ;;  %v2093_v36 = vpop.permute.xlu0 %2092 }
 0x245   :  { %2597 = vmatpush2.bf16.msra.mxu1 %v3130_v47  ;;  %v2303_v47 = vrot.slane %v2289_v0, %v3334_v37 }
 0x246   :  { %2598 = vmatprep.subr.bf16.mxu1 %v3237_v1  ;;  %v4514_v1 = vld [vmem:[#allocation19_spill] sm:$0xff] }
 0x247   :  { %v2288_v31 = vcombine.low %v4514_v1, %v4513_v44  ;;  %v1696_v20 = vcombine.low %v4515_v38, %v4514_v1  ;;  %v2337_v1 = vrot.slane %v2323_v57, %v3334_v37 }
 0x249   :  { %2599 = vmatpush2.bf16.msra.mxu1 %v3131_v49  ;;  %v2296_v21 = vrot.slane %v2288_v31, %v3334_v37  ;;  %v1704_v32 = vrot.slane %v1696_v20, %v3334_v37 }
 0x24b   :  { %v2304_v2 = vcombine.low %v2296_v21, %v2303_v47  ;;  %v1712_v49 = vcombine.low %v1704_v32, %v1711_v54 }
 0x24c   :  { %2601 = vmatmul.mubr.bf16.vlgmr.msra.gmra.mxu1 %v2434_v42 }
 0x24d   :  { %3001 = vmatprep.mubr.msk.bf16.mxu1 %vm2390_vm13, %v2287_v19  ;;  %v2399_v10 = vsel %vm2390_vm13, %v1712_v49, %v1939_v61  ;;  %v2322_v19 = vcombine.low %v3601_v18, %v4518_v16  ;;  %v2339_v18 = vcombine.low %v3664_v17, %v3676_v59  ;;  %v4519_v61 = vld [vmem:[#allocation21_spill] sm:$0xff] }
 0x24e   :  { %v2421_v34 = vsel %vm2415_vm2, %v2399_v10, %v2091_v4  ;;  %v1941_v24 = vpop.permute.xlu1 %1940  ;;  %v1747_v54 = vcombine.low %v4519_v61, %v3664_v17 }
 0x24f   :  { %v2440_v42 = vsel %vm2432_vm3, %v2421_v34, %v2243_v46  ;;  %v2402_v44 = vsel %vm2390_vm13, %v1729_v45, %v1941_v24  ;;  %v2330_v60 = vrot.slane %v2322_v19, %v3334_v37  ;;  %v2347_v63 = vrot.slane %v2339_v18, %v3334_v37  ;;  %v3132_v34 = vld [vmem:[#allocation7 + $0x38] sm:$0xff]   ;;  %v4369_v24 = vld [vmem:[%s4423_s3] ss:$0 sm:$0xff] }
 0x250   :  { %v2423_v8 = vsel %vm2415_vm2, %v2402_v44, %v2093_v36  ;;  %3081 = vmatpush3.bf16.msra.mxu0 %v3132_v34  ;;  %v4376_v19 = vld [vmem:[#allocation5 + $0x8] sm:$0xff] }
 0x251   :  { %v2338_v38 = vcombine.low %v2330_v60, %v2337_v1  ;;  %v2355_v47 = vcombine.low %v2347_v63, %v2354_v22  ;;  %3082 = vmatprep.subr.bf16.mxu0 %v4520_v9 }
 0x254   :  { %2609 = vmatmul.mubr.bf16.gmra.mxu1 %v2437_v62  ;;  %3083 = vmatpush3.bf16.msra.mxu0 %v3133_v55 }
 0x255   :  { %3002 = vmatprep.mubr.msk.bf16.mxu1 %vm2390_vm13, %v2304_v2  ;;  %v1755_v2 = vrot.slane %v1747_v54, %v3334_v37  ;;  %3084 = vmatprep.subr.bf16.mxu0 %v4520_v9 }
 0x257   :  { %v1763_v4 = vcombine.low %v1755_v2, %v1762_v48 }
 0x258   :  { %v1943_v20 = vpop.permute.xlu0 %1942  ;;  %3085 = vmatpush3.bf16.msra.mxu0 %v3134_v27 }
 0x259   :  { %v2405_v50 = vsel %vm2390_vm13, %v1746_v14, %v1943_v20  ;;  %3086 = vmatprep.subr.bf16.mxu0 %v4520_v9 }
 0x25c   :  { %2617 = vmatmul.mubr.bf16.gmra.mxu1 %v2440_v42  ;;  %3087 = vmatpush3.bf16.msra.mxu0 %v3135_v43  ;;  %v3139_v42 = vld [vmem:[#allocation7] sm:$0xff]  }
 0x25d   :  { %3003 = vmatprep.mubr.msk.bf16.mxu1 %vm2390_vm13, %v2321_v40  ;;  %3088 = vmatprep.subr.bf16.mxu0 %v4520_v9 }
 0x25f   :  { %v2245_v31 = vpop.permute.xlu1 %2244 }
 0x260   :  { %v2443_v33 = vsel %vm2432_vm3, %v2423_v8, %v2245_v31  ;;  %3089 = vmatpush3.bf16.msra.mxu0 %v3136_v15 }
 0x261   :  { %3090 = vmatprep.subr.bf16.mxu0 %v4520_v9 }
 0x263   :  { %v2247_v32 = vpop.permute.xlu0 %2246 }
 0x264   :  { %2625 = vmatmul.mubr.bf16.gmra.mxu1 %v2443_v33 }
 0x265   :  { %3004 = vmatprep.mubr.msk.bf16.mxu1 %vm2390_vm13, %v2338_v38  ;;  %v2095_v0 = vpop.permute.xlu1 %2094 }
 0x266   :  { %v2425_v21 = vsel %vm2415_vm2, %v2405_v50, %v2095_v0 }
 0x267   :  { %v2446_v62 = vsel %vm2432_vm3, %v2425_v21, %v2247_v32 }
 0x269   :  { %v2097_v49 = vpop.permute.xlu0 %2096 }
 0x26c   :  { %2633 = vmatmul.mubr.bf16.gmra.mxu1 %v2446_v62 }
 0x26d   :  { %3005 = vmatprep.mubr.msk.bf16.mxu1 %vm2390_vm13, %v2355_v47 }
 0x275   :  { %v1945_v56 = vpop.permute.xlu1 %1944 }
 0x276   :  { %v2408_v23 = vsel %vm2390_vm13, %v1763_v4, %v1945_v56 }
 0x277   :  { %v2427_v30 = vsel %vm2415_vm2, %v2408_v23, %v2097_v49 }
 0x27f   :  { %v1947_v53 = vpop.permute.xlu0 %1946 }
 0x280   :  { %v2411_v37 = vsel %vm2390_vm13, %v1780_v58, %v1947_v53 }
 0x286   :  { %v2249_v10 = vpop.permute.xlu1 %2248 }
 0x287   :  { %v2449_v41 = vsel %vm2432_vm3, %v2427_v30, %v2249_v10 }
 0x288   :  { %2641 = vmatmul.mubr.bf16.gmra.mxu1 %v2449_v41 }
 0x289   :  { %3006 = vmatprep.mubr.msk.bf16.mxu1 %vm2390_vm13, %v2372_v6  ;;  %v2251_v59 = vpop.permute.xlu0 %2250 }
 0x28b   :  { %v2099_v5 = vpop.permute.xlu1 %2098 }
 0x28c   :  { %v2429_v17 = vsel %vm2415_vm2, %v2411_v37, %v2099_v5 }
 0x28d   :  { %v2452_v46 = vsel %vm2432_vm3, %v2429_v17, %v2251_v59 }
 0x290   :  { %2649 = vmatmul.mubr.bf16.gmra.mxu1 %v2452_v46 }
 0x291   :  { %3007 = vmatprep.mubr.msk.bf16.mxu1 %vm2390_vm13, %v2389_v28  ;;  %v2101_v51 = vpop.permute.xlu0 %2100  ;;  %v3138_v28 = vld [vmem:[#allocation7 + $0x8] sm:$0xff]  }
 0x29b   :  { %v1949_v26 = vpop.permute.xlu1 %1948 }
 0x29c   :  { %v2414_v25 = vsel %vm2390_vm13, %v1797_v29, %v1949_v26  ;;  %vm3238_vm13 = vmmov 0   ;;  %v3137_v29 = vld [vmem:[#allocation7 + $0x10] sm:$0xff]  }
 0x29d   :  { %v2431_v12 = vsel %vm2415_vm2, %v2414_v25, %v2101_v51  ;;  %3096 = vmatprep.mubr.msk.bf16.mxu0 %vm3238_vm13, %v4520_v9  ;;  %3091 = vmatpush3.bf16.msra.mxu0 %v3137_v29 }
 0x29e   :  { %3092 = vmatprep.subr.bf16.mxu0 %v4520_v9 }
 0x2a1   :  { %v2253_v58 = vpop.permute.xlu1 %2252  ;;  %3093 = vmatpush3.bf16.msra.mxu0 %v3138_v28 }
 0x2a2   :  { %v2455_v6 = vsel %vm2432_vm3, %v2431_v12, %v2253_v58  ;;  %3094 = vmatprep.subr.bf16.mxu0 %v4520_v9 }
 0x2a3   :  { %2657 = vmatmul.mubr.bf16.gmra.mxu1 %v2455_v6 }
 0x2a5   :  { %3095 = vmatpush3.bf16.msra.mxu0 %v3139_v42 }
 0x30c   :  { %v2602_v3 = vpop.f32.mrf.mxu1 }
 0x30d   :  { %v2603_v40 = vadd.f32 %v4369_v24, %v2602_v3 }
 0x30e   :  { %v2604_v57 = vpop.f32.mrf.mxu1 }
 0x30f   :  { %v2665_v39 = vmax.f32 %v2603_v40, 0.0 }
 0x310   :  { %v2605_v45 = vpop.f32.mrf.mxu1 }
 0x311   :  { %v2606_v16 = vadd.f32 %v4369_v24, %v2605_v45  ;;  %v2683_v31 = vmul.f32 %v4374_v7, %v2665_v39 }
 0x312   :  { %v2607_v36 = vpop.f32.mrf.mxu1 }
 0x313   :  { %v2666_v44 = vmax.f32 %v2606_v16, 0.0 }
 0x314   :  { %v2610_v1 = vpop.f32.mrf.mxu1 }
 0x315   :  { %v2684_v35 = vmul.f32 %v4376_v19, %v2666_v44  ;;  %v2611_v13 = vadd.f32 %v4369_v24, %v2610_v1 }
 0x316   :  { %v2612_v60 = vpop.f32.mrf.mxu1 }
 0x317   :  { %v2699_v8 = vmax.f32 %v2683_v31, %v2684_v35  ;;  %v2667_v18 = vmax.f32 %v2611_v13, 0.0 }
 0x318   :  { %v2613_v33 = vpop.f32.mrf.mxu1 }
 0x319   :  { %v2700_v38 = vrot.slane %v2699_v8, 4  ;;  %v2614_v20 = vadd.f32 %v4369_v24, %v2613_v33  ;;  %v2685_v21 = vmul.f32 %v4374_v7, %v2667_v18 }
 0x31a   :  { %v2615_v14 = vpop.f32.mrf.mxu1 }
 0x31b   :  { %v2701_v52 = vmax.f32 %v2699_v8, %v2700_v38  ;;  %v2668_v0 = vmax.f32 %v2614_v20, 0.0 }
 0x31c   :  { %v2618_v50 = vpop.f32.mrf.mxu1 }
 0x31d   :  { %v2702_v63 = vrot.slane %v2701_v52, 2  ;;  %v2686_v22 = vmul.f32 %v4376_v19, %v2668_v0  ;;  %v2619_v32 = vadd.f32 %v4369_v24, %v2618_v50 }
 0x31e   :  { %v2620_v62 = vpop.f32.mrf.mxu1 }
 0x31f   :  { %v2703_v47 = vmax.f32 %v2701_v52, %v2702_v63  ;;  %v2706_v61 = vmax.f32 %v2685_v21, %v2686_v22  ;;  %v2669_v2 = vmax.f32 %v2619_v32, 0.0 }
 0x320   :  { %v2621_v54 = vpop.f32.mrf.mxu1 }
 0x321   :  { %v2707_v11 = vrot.slane %v2706_v61, 4  ;;  %v2622_v48 = vadd.f32 %v4369_v24, %v2621_v54  ;;  %v2704_v4 = vrot.slane %v2703_v47, 1  ;;  %v2687_v41 = vmul.f32 %v4374_v7, %v2669_v2 }
 0x322   :  { %v2623_v56 = vpop.f32.mrf.mxu1 }
 0x323   :  { %v2708_v49 = vmax.f32 %v2706_v61, %v2707_v11  ;;  %v2670_v23 = vmax.f32 %v2622_v48, 0.0  ;;  %v2705_v5 = vmax.f32 %v2703_v47, %v2704_v4 }
 0x324   :  { %v2626_v10 = vpop.f32.mrf.mxu1 }
 0x325   :  { %v2709_v30 = vrot.slane %v2708_v49, 2  ;;  %v2688_v53 = vmul.f32 %v4376_v19, %v2670_v23  ;;  %v2755_v58 = vpack.c.bf16 %v2705_v5, %v2705_v5  ;;  %v2627_v60 = vadd.f32 %v4369_v24, %v2626_v10 }
 0x326   :  { %v2628_v37 = vpop.f32.mrf.mxu1 }
 0x327   :  { %v2710_v17 = vmax.f32 %v2708_v49, %v2709_v30  ;;  %v2713_v59 = vmax.f32 %v2687_v41, %v2688_v53  ;;  %v2794_v43 = vunpack.c.l.b16 %v2755_v58  ;;  %v2671_v50 = vmax.f32 %v2627_v60, 0.0 }
 0x328   :  { %v2629_v46 = vpop.f32.mrf.mxu1 }
 0x329   :  { %v2711_v26 = vrot.slane %v2710_v17, 1  ;;  %v2714_v25 = vrot.slane %v2713_v59, 4  ;;  %v2630_v31 = vadd.f32 %v4369_v24, %v2629_v46  ;;  %v2689_v48 = vmul.f32 %v4374_v7, %v2671_v50 }
 0x32a   :  { %v2631_v51 = vpop.f32.mrf.mxu1 }
 0x32b   :  { %v2712_v12 = vmax.f32 %v2710_v17, %v2711_v26  ;;  %v2715_v6 = vmax.f32 %v2713_v59, %v2714_v25  ;;  %v2672_v18 = vmax.f32 %v2630_v31, 0.0 }
 0x32c   :  { %v2634_v34 = vpop.f32.mrf.mxu1 }
 0x32d   :  { %v2756_v9 = vpack.c.bf16 %v2712_v12, %v2712_v12  ;;  %v2716_v55 = vrot.slane %v2715_v6, 2  ;;  %v2635_v38 = vadd.f32 %v4369_v24, %v2634_v34  ;;  %v2690_v62 = vmul.f32 %v4376_v19, %v2672_v18 }
 0x32e   :  { %v2636_v27 = vpop.f32.mrf.mxu1 }
 0x32f   :  { %v2795_v15 = vunpack.c.l.b16 %v2756_v9  ;;  %v2717_v29 = vmax.f32 %v2715_v6, %v2716_v55  ;;  %v2673_v22 = vmax.f32 %v2635_v38, 0.0  ;;  %v2720_v23 = vmax.f32 %v2689_v48, %v2690_v62 }
 0x330   :  { %v2637_v28 = vpop.f32.mrf.mxu1 }
 0x331   :  { %v2803_v3 = vsel %vm2802_vm4, %v2795_v15, %v2794_v43  ;;  %v2718_v42 = vrot.slane %v2717_v29, 1  ;;  %v2638_v13 = vadd.f32 %v4369_v24, %v2637_v28  ;;  %v2691_v4 = vmul.f32 %v4374_v7, %v2673_v22 }
 0x332   :  { %v2639_v40 = vpop.f32.mrf.mxu1  ;;  %v2721_v5 = vrot.slane %v2720_v23, 4 }
 0x333   :  { %v2719_v57 = vmax.f32 %v2717_v29, %v2718_v42  ;;  %v2674_v52 = vmax.f32 %v2638_v13, 0.0 }
 0x334   :  { %v2722_v26 = vmax.f32 %v2720_v23, %v2721_v5  ;;  %v3008_v23 = vld [vmem:[%s4426_s6] ss:$0 sm:$0xff] }
 0x335   :  { %v2757_v45 = vpack.c.bf16 %v2719_v57, %v2719_v57  ;;  %v2692_v54 = vmul.f32 %v4376_v19, %v2674_v52 }
 0x336   :  { %v2723_v6 = vrot.slane %v2722_v26, 2 }
 0x337   :  { %v2796_v39 = vunpack.c.l.b16 %v2757_v45  ;;  %v2727_v30 = vmax.f32 %v2691_v4, %v2692_v54 }
 0x338   :  { %v2724_v29 = vmax.f32 %v2722_v26, %v2723_v6 }
 0x339   :  { %v4389_v16 = vsel %vm1393_vm9, %v2796_v39, %v2803_v3  ;;  %v2728_v17 = vrot.slane %v2727_v30, 4  ;;  %vm2806_vm9 = vcmask 1043459  }
 0x33b   :  { %v2729_v25 = vmax.f32 %v2727_v30, %v2728_v17 }
 0x33d   :  { %v2730_v9 = vrot.slane %v2729_v25, 2 }
 0x33f   :  { %v2731_v42 = vmax.f32 %v2729_v25, %v2730_v9 }
 0x341   :  { %v2732_v31 = vrot.slane %v2731_v42, 1 }
 0x343   :  { %v2733_v38 = vmax.f32 %v2731_v42, %v2732_v31 }
 0x348   :  { %v2642_v36 = vpop.f32.mrf.mxu1 }
 0x349   :  { %v2643_v20 = vadd.f32 %v4369_v24, %v2642_v36  ;;  %v2725_v36 = vrot.slane %v2724_v29, 1 }
 0x34a   :  { %v2644_v44 = vpop.f32.mrf.mxu1 }
 0x34b   :  { %v2675_v47 = vmax.f32 %v2643_v20, 0.0 }
 0x34c   :  { %v2645_v1 = vpop.f32.mrf.mxu1 }
 0x34d   :  { %v2646_v8 = vadd.f32 %v4369_v24, %v2645_v1  ;;  %v2693_v10 = vmul.f32 %v4374_v7, %v2675_v47 }
 0x34e   :  { %v2647_v35 = vpop.f32.mrf.mxu1 }
 0x34f   :  { %v2676_v63 = vmax.f32 %v2646_v8, 0.0  ;;  %v2726_v8 = vmax.f32 %v2724_v29, %v2725_v36 }
 0x350   :  { %v2650_v33 = vpop.f32.mrf.mxu1 }
 0x351   :  { %v2651_v0 = vadd.f32 %v4369_v24, %v2650_v33  ;;  %v2694_v56 = vmul.f32 %v4376_v19, %v2676_v63 }
 0x352   :  { %v2652_v14 = vpop.f32.mrf.mxu1 }
 0x353   :  { %v2677_v11 = vmax.f32 %v2651_v0, 0.0  ;;  %v2734_v53 = vmax.f32 %v2693_v10, %v2694_v56  ;;  %v2758_v14 = vpack.c.bf16 %v2726_v8, %v2726_v8  ;;  %v2759_v0 = vpack.c.bf16 %v2733_v38, %v2733_v38 }
 0x354   :  { %v2653_v21 = vpop.f32.mrf.mxu1 }
 0x355   :  { %v2654_v32 = vadd.f32 %v4369_v24, %v2653_v21  ;;  %v2695_v41 = vmul.f32 %v4374_v7, %v2677_v11  ;;  %v2735_v59 = vrot.slane %v2734_v53, 4  ;;  %v2797_v22 = vunpack.c.l.b16 %v2758_v14 }
 0x356   :  { %v2655_v61 = vpop.f32.mrf.mxu1 }
 0x357   :  { %v2678_v2 = vmax.f32 %v2654_v32, 0.0  ;;  %v2736_v51 = vmax.f32 %v2734_v53, %v2735_v59  ;;  %v2807_v61 = vsel %vm2806_vm9, %v2797_v22, %v4389_v16 }
 0x359   :  { %v2696_v49 = vmul.f32 %v4376_v19, %v2678_v2  ;;  %v2737_v27 = vrot.slane %v2736_v51, 2 }
 0x35b   :  { %v2741_v37 = vmax.f32 %v2695_v41, %v2696_v49  ;;  %v2738_v57 = vmax.f32 %v2736_v51, %v2737_v27 }
 0x35d   :  { %v2742_v46 = vrot.slane %v2741_v37, 4  ;;  %v2739_v35 = vrot.slane %v2738_v57, 1 }
 0x35f   :  { %v2743_v58 = vmax.f32 %v2741_v37, %v2742_v46  ;;  %v2740_v18 = vmax.f32 %v2738_v57, %v2739_v35 }
 0x361   :  { %v2744_v43 = vrot.slane %v2743_v58, 2  ;;  %v2760_v50 = vpack.c.bf16 %v2740_v18, %v2740_v18 }
 0x363   :  { %v2658_v12 = vpop.f32.mrf.mxu1  ;;  %v2745_v39 = vmax.f32 %v2743_v58, %v2744_v43  ;;  %v2799_v32 = vunpack.c.l.b16 %v2760_v50 }
 0x364   :  { %v2659_v34 = vadd.f32 %v4369_v24, %v2658_v12 }
 0x365   :  { %v2660_v55 = vpop.f32.mrf.mxu1  ;;  %v2746_v60 = vrot.slane %v2745_v39, 1 }
 0x366   :  { %v2679_v28 = vmax.f32 %v2659_v34, 0.0 }
 0x367   :  { %v2661_v15 = vpop.f32.mrf.mxu1 }
 0x368   :  { %v2662_v3 = vadd.f32 %v4369_v24, %v2661_v15  ;;  %v2697_v44 = vmul.f32 %v4374_v7, %v2679_v28  ;;  %v2747_v24 = vmax.f32 %v2745_v39, %v2746_v60 }
 0x369   :  { %v2663_v40 = vpop.f32.mrf.mxu1 }
 0x36a   :  { %v2680_v45 = vmax.f32 %v2662_v3, 0.0  ;;  %v2761_v21 = vpack.c.bf16 %v2747_v24, %v2747_v24 }
 0x36c   :  { %v2698_v1 = vmul.f32 %v4376_v19, %v2680_v45  ;;  %v2798_v19 = vunpack.c.l.b16 %v2759_v0  ;;  %v2800_v47 = vunpack.c.l.b16 %v2761_v21 }
 0x36e   :  { %v2748_v13 = vmax.f32 %v2697_v44, %v2698_v1  ;;  %v2809_v11 = vsel %vm1395_vm10, %v2798_v19, %v2807_v61 }
 0x36f   :  { %v2811_v2 = vsel %vm2810_vm5, %v2799_v32, %v2809_v11 }
 0x370   :  { %v2749_v33 = vrot.slane %v2748_v13, 4  ;;  %v2813_v56 = vsel %vm1397_vm15, %v2800_v47, %v2811_v2 }
 0x372   :  { %v2750_v20 = vmax.f32 %v2748_v13, %v2749_v33 }
 0x374   :  { %v2751_v52 = vrot.slane %v2750_v20, 2 }
 0x376   :  { %v2752_v63 = vmax.f32 %v2750_v20, %v2751_v52 }
 0x378   :  { %v2753_v7 = vrot.slane %v2752_v63, 1 }
 0x37a   :  { %v2754_v62 = vmax.f32 %v2752_v63, %v2753_v7 }
 0x37c   :  { %v2762_v54 = vpack.c.bf16 %v2754_v62, %v2754_v62 }
 0x37e   :  { %v2801_v48 = vunpack.c.l.b16 %v2762_v54 }
 0x380   :  { %v2815_v4 = vsel %vm2814_vm6, %v2801_v48, %v2813_v56 }
 0x381   :  { %v2816_v49 = vpack.c.b16 %v2815_v4, %v2815_v4 }
 0x383   :  { %3097 = vmatmul.mubr.bf16.vlgmr.msra.gmra.mxu0 %v2816_v49 }
 0x443   :  { %v2900_v10 = vpop.f32.mrf.mxu0 }
 0x444   :  { %v2901_v30 = vadd.f32 %v3008_v23, %v2900_v10 }
 0x445   :  { %v3098_v16 = vpop.f32.mrf.mxu0 }
 0x446   :  { %2906 = vst [vmem:[#allocation8] sm:$0xff] %v2901_v30 }
 0x447   :  { %v2903_v41 = vpop.f32.mrf.mxu0 }
 0x448   :  { %3211 = shalt.err (!%p3208_p5)
}
 0x449   :  { %2916 = dma.vmem_to_hbm [thread:$0]  %s2914_s8, 128, %s4427_s7, [#allocation4]   ;;  %v3099_v53 = vpop.f32.mrf.mxu0 }
 0x44a   :  { %3224 = dma.done.wait [#allocation4], 128  }
 0x44b   :  { %3225 = vsyncadd [#allocation4], 4294967168 }
 0x44c   :  { %2920 = vsyncpa [#allocation3], 1 }
 0x44d   :  { %2921 = vsyncpa [#allocation6], 1 }
 0x44e   :  { %2922 = vsyncpa [#allocation4], 1 }

</bundles_post_ra>
